<compile_context>
chip_gen: v6e
topology: v6e:2x2x1
jax: 0.10.0
libtpu: 0.0.40
codegen_flags: <defaults>
</compile_context>

<pallas_src>
import math
import functools

import numpy as np
import jax
import jax.numpy as jnp
from jax.experimental import pallas as pl
from jax.experimental.pallas import tpu as pltpu


# --------------------------------------------------------------------------
# Fully fused forward kernel (single grid step)
# --------------------------------------------------------------------------
def _fused_forward_kernel(ids_ref, emb_ref, pe_ref, mask_ref,
                          wqkv_ref, bqkv_ref, wo_ref, w1_ref, b1_ref, w2_ref,
                          vecs_ref, wdec_ref, bdec_ref, out_ref,
                          *, nlayers, nhead, hp, d_model, eps):
    f32 = jnp.float32
    bf16 = jnp.bfloat16
    BS = ids_ref.shape[0]
    NTOK_PAD = emb_ref.shape[0]
    D_PAD = emb_ref.shape[1]
    NHP = nhead * hp
    inv_d = 1.0 / d_model

    # ---- embedding lookup as a one-hot bf16 MXU matmul (sqrt(d_model) folded
    #      into the table); + positional encoding in f32 ----
    ids = ids_ref[...]                                              # (BS, 1) i32
    tok_iota = jax.lax.broadcasted_iota(jnp.int32, (BS, NTOK_PAD), 1)
    onehot = jnp.where(tok_iota == ids, 1.0, 0.0).astype(bf16)      # (BS, NTOK_PAD)
    x = jnp.dot(onehot, emb_ref[...], preferred_element_type=f32)   # (BS, D_PAD)
    x = x + pe_ref[...]

    # lane mask over the real d_model lanes: LayerNorm stats must ignore padding
    lane_mask = (jax.lax.broadcasted_iota(jnp.int32, (1, D_PAD), 1)
                 < d_model).astype(f32)
    mask = mask_ref[...]                                            # (BS, BS)

    def layer_norm(h, g, b):
        # biased variance over the real d_model lanes only (torch semantics)
        mu = jnp.sum(h, axis=-1, keepdims=True) * inv_d
        c = (h - mu) * lane_mask
        var = jnp.sum(c * c, axis=-1, keepdims=True) * inv_d
        return c * jax.lax.rsqrt(var + eps) * g + b

    for l in range(nlayers):                       # static unroll (nlayers = 2)
        wqkv, bqkv = wqkv_ref[l], bqkv_ref[l]
        wo, w1, b1, w2 = wo_ref[l], w1_ref[l], b1_ref[l], w2_ref[l]
        vecs = vecs_ref[l]                         # (8, D_PAD) packed vectors
        b_o, ln1_g, ln1_b = vecs[0:1], vecs[1:2], vecs[2:3]
        b2, ln2_g, ln2_b = vecs[3:4], vecs[4:5], vecs[5:6]

        # fused QKV projection: one bf16 MXU push, f32 accumulate
        qkv = jnp.dot(x.astype(bf16), wqkv, preferred_element_type=f32) + bqkv

        # per-head attention; each head occupies a 128-lane-aligned slab so all
        # slices below are lane-tile aligned (no masked lane copies).
        ctx_heads = []
        for h in range(nhead):                     # static unroll (nhead = 2)
            qh = qkv[:, h * hp:(h + 1) * hp].astype(bf16)
            kh = qkv[:, NHP + h * hp:NHP + (h + 1) * hp].astype(bf16)
            vh = qkv[:, 2 * NHP + h * hp:2 * NHP + (h + 1) * hp].astype(bf16)
            # scores: contract feature dim of both operands (no in-kernel .T);
            # 1/sqrt(head_dim) already folded into Wq/bq.
            s = jax.lax.dot_general(qh, kh, (((1,), (1,)), ((), ())),
                                    preferred_element_type=f32)     # (BS, BS)
            s = s + mask                           # causal + batch-block mask
            s = s - jnp.max(s, axis=-1, keepdims=True)
            p = jnp.exp(s)
            # approx EUP reciprocal: tiny deviation from exact softmax (eval only)
            p = p * pl.reciprocal(jnp.sum(p, axis=-1, keepdims=True), approx=True)
            ctx_heads.append(jnp.dot(p.astype(bf16), vh,
                                     preferred_element_type=f32))   # (BS, hp)
        ctx = jnp.concatenate(ctx_heads, axis=-1)                   # (BS, NHP)
        # single output projection on the concatenated context
        ctx = jnp.dot(ctx.astype(bf16), wo, preferred_element_type=f32) + b_o

        y1 = layer_norm(x + ctx, ln1_g, ln1_b)     # add & LN1 (post-norm)

        # feed-forward (ReLU); dropout = identity in eval
        f = jnp.dot(y1.astype(bf16), w1, preferred_element_type=f32) + b1
        f = jnp.maximum(f, 0.0)
        f = jnp.dot(f.astype(bf16), w2, preferred_element_type=f32) + b2

        x = layer_norm(y1 + f, ln2_g, ln2_b)       # add & LN2

    # decoder linear fused into the same kernel; lane-dense (BS, NTOK_PAD) store
    logits = jnp.dot(x.astype(bf16), wdec_ref[...], preferred_element_type=f32)
    out_ref[...] = (logits + bdec_ref[...]).astype(out_ref.dtype)


# --------------------------------------------------------------------------
# Wrapper: one pallas_call for the whole forward
# --------------------------------------------------------------------------
def transformer_forward(src, src_mask, prep, *, d_model, nhead, ntoken):
    """src: (S, B) int32 tokens, src_mask: (S, S) additive float mask.
    Returns (S, B, ntoken) float32 (same as the PyTorch module)."""
    S, B = src.shape
    BS = S * B
    nlayers = prep["wqkv"].shape[0]
    hp = prep["wqkv"].shape[2] // (3 * nhead)
    D_PAD = prep["emb"].shape[1]
    NTOK_PAD = prep["wdec"].shape[1]

    # seq-major row order (row r = s*B + b) so the kernel output reshapes
    # directly to (S, B, ntoken) with no transpose.
    ids = src.reshape(BS, 1).astype(jnp.int32)
    pe_rows = jnp.repeat(prep["pe"][:S], B, axis=0)                 # (BS, D_PAD)

    # combined additive mask: causal (src_mask) AND same-batch block-diagonal
    s_idx = jnp.repeat(jnp.arange(S), B)
    b_idx = jnp.tile(jnp.arange(B), S)
    attn_mask = jnp.where(b_idx[:, None] == b_idx[None, :],
                          src_mask[s_idx[:, None], s_idx[None, :]],
                          jnp.float32(-1e9)).astype(jnp.float32)    # (BS, BS)

    kernel = functools.partial(_fused_forward_kernel,
                               nlayers=nlayers, nhead=nhead, hp=hp,
                               d_model=d_model, eps=1e-5)

    def full(a):
        z = (0,) * a.ndim
        return pl.BlockSpec(a.shape, lambda i, z=z: z)

    inputs = [ids, prep["emb"], pe_rows, attn_mask,
              prep["wqkv"], prep["bqkv"], prep["wo"],
              prep["w1"], prep["b1"], prep["w2"], prep["vecs"],
              prep["wdec"], prep["bdec"]]

    out = pl.pallas_call(
        kernel,
        out_shape=jax.ShapeDtypeStruct((BS, NTOK_PAD), jnp.float32),
        grid=(1,),
        in_specs=[full(a) for a in inputs],
        out_specs=pl.BlockSpec((BS, NTOK_PAD), lambda i: (0, 0)),
        compiler_params=pltpu.CompilerParams(
            dimension_semantics=("arbitrary",)),
    )(*inputs)

    return out.reshape(S, B, NTOK_PAD)[:, :, :ntoken]


# --------------------------------------------------------------------------
# Parameter construction (PyTorch layout) + prep into padded bf16 kernel layout
# --------------------------------------------------------------------------
def make_positional_encoding(d_model, max_len):
    position = jnp.arange(max_len, dtype=jnp.float32)[:, None]
    div_term = jnp.exp(jnp.arange(0, d_model, 2, dtype=jnp.float32)
                       * (-math.log(10000.0) / d_model))
    ang = position * div_term
    pe = jnp.zeros((max_len, 1, d_model), dtype=jnp.float32)
    pe = pe.at[:, 0, 0::2].set(jnp.sin(ang))
    pe = pe.at[:, 0, 1::2].set(jnp.cos(ang))
    return pe


def init_params_torch(key, ntoken, d_model, d_hid, nlayers, max_len=64):
    """Parameters in PyTorch layout (dout, din), mirroring TransformerModel.init_weights."""
    initrange = 0.1
    keys = jax.random.split(key, 2 + nlayers)
    params = {
        "emb": jax.random.uniform(keys[0], (ntoken, d_model), jnp.float32,
                                  -initrange, initrange),
        "dec_w": jax.random.uniform(keys[1], (ntoken, d_model), jnp.float32,
                                    -initrange, initrange),
        "dec_b": jnp.zeros((ntoken,), jnp.float32),
        "pe": make_positional_encoding(d_model, max_len),
        "layers": [],
    }
    for l in range(nlayers):
        ks = jax.random.split(keys[2 + l], 4)
        params["layers"].append(dict(
            in_proj_w=jax.random.normal(ks[0], (3 * d_model, d_model), jnp.float32) * 0.05,
            in_proj_b=jnp.zeros((3 * d_model,), jnp.float32),
            out_proj_w=jax.random.normal(ks[1], (d_model, d_model), jnp.float32) * 0.05,
            out_proj_b=jnp.zeros((d_model,), jnp.float32),
            lin1_w=jax.random.normal(ks[2], (d_hid, d_model), jnp.float32) * 0.05,
            lin1_b=jnp.zeros((d_hid,), jnp.float32),
            lin2_w=jax.random.normal(ks[3], (d_model, d_hid), jnp.float32) * 0.05,
            lin2_b=jnp.zeros((d_model,), jnp.float32),
            ln1_g=jnp.ones((d_model,), jnp.float32),
            ln1_b=jnp.zeros((d_model,), jnp.float32),
            ln2_g=jnp.ones((d_model,), jnp.float32),
            ln2_b=jnp.zeros((d_model,), jnp.float32),
        ))
    return params


def _ceil_to(x, m):
    return ((x + m - 1) // m) * m


def prepare_params(raw, *, d_model, nhead):
    """Pad every dim to 128-lane multiples, pre-transpose weights to (din, dout),
    split each head into its own 128-lane slab, fold sqrt(d_model) into the
    embedding table and 1/sqrt(head_dim) into Wq/bq, cast matmul weights to bf16,
    and pack small per-layer vectors into one (8, D_PAD) array."""
    d = d_model
    hd = d // nhead
    HP = max(128, _ceil_to(hd, 128))
    D_PAD = max(128, _ceil_to(d, 128))
    NHP = nhead * HP

    emb = np.asarray(raw["emb"], np.float32)
    ntoken = emb.shape[0]
    NTOK_PAD = max(128, _ceil_to(ntoken, 128))
    d_hid = np.asarray(raw["layers"][0]["lin1_w"]).shape[0]
    DH_PAD = max(128, _ceil_to(d_hid, 128))

    emb_p = np.zeros((NTOK_PAD, D_PAD), np.float32)
    emb_p[:ntoken, :d] = emb * math.sqrt(d)                 # fold sqrt(d_model)

    pe = np.asarray(raw["pe"], np.float32)                  # (max_len, 1, d)
    pe_p = np.zeros((pe.shape[0], D_PAD), np.float32)
    pe_p[:, :d] = pe[:, 0, :]

    qscale = 1.0 / math.sqrt(hd)                            # fold 1/sqrt(hd)

    def heads_cols(w_t, scale):                             # (d, d) -> (D_PAD, NHP)
        out = np.zeros((D_PAD, NHP), np.float32)
        for h in range(nhead):
            out[:d, h * HP:h * HP + hd] = w_t[:, h * hd:(h + 1) * hd] * scale
        return out

    def heads_vec(b, scale):                                # (d,) -> (NHP,)
        out = np.zeros((NHP,), np.float32)
        for h in range(nhead):
            out[h * HP:h * HP + hd] = b[h * hd:(h + 1) * hd] * scale
        return out

    wqkv_l, bqkv_l, wo_l, w1_l, b1_l, w2_l, vecs_l = [], [], [], [], [], [], []
    for L in raw["layers"]:
        ipw = np.asarray(L["in_proj_w"], np.float32)        # (3d, d) torch layout
        ipb = np.asarray(L["in_proj_b"], np.float32)
        wq_t, wk_t, wv_t = ipw[0:d].T, ipw[d:2 * d].T, ipw[2 * d:3 * d].T
        bq, bk, bv = ipb[0:d], ipb[d:2 * d], ipb[2 * d:3 * d]

        wqkv_l.append(np.concatenate([heads_cols(wq_t, qscale),
                                      heads_cols(wk_t, 1.0),
                                      heads_cols(wv_t, 1.0)], axis=1))
        bqkv_l.append(np.concatenate([heads_vec(bq, qscale),
                                      heads_vec(bk, 1.0),
                                      heads_vec(bv, 1.0)])[None, :])

        wo_t = np.asarray(L["out_proj_w"], np.float32).T    # (d, d) (din, dout)
        wo = np.zeros((NHP, D_PAD), np.float32)
        for h in range(nhead):
            wo[h * HP:h * HP + hd, :d] = wo_t[h * hd:(h + 1) * hd, :]
        wo_l.append(wo)

        w1 = np.zeros((D_PAD, DH_PAD), np.float32)
        w1[:d, :d_hid] = np.asarray(L["lin1_w"], np.float32).T
        w1_l.append(w1)
        b1 = np.zeros((1, DH_PAD), np.float32)
        b1[0, :d_hid] = np.asarray(L["lin1_b"], np.float32)
        b1_l.append(b1)
        w2 = np.zeros((DH_PAD, D_PAD), np.float32)
        w2[:d_hid, :d] = np.asarray(L["lin2_w"], np.float32).T
        w2_l.append(w2)

        vecs = np.zeros((8, D_PAD), np.float32)             # packed small params
        vecs[0, :d] = np.asarray(L["out_proj_b"], np.float32)   # b_o
        vecs[1, :d] = np.asarray(L["ln1_g"], np.float32)
        vecs[2, :d] = np.asarray(L["ln1_b"], np.float32)
        vecs[3, :d] = np.asarray(L["lin2_b"], np.float32)        # b2
        vecs[4, :d] = np.asarray(L["ln2_g"], np.float32)
        vecs[5, :d] = np.asarray(L["ln2_b"], np.float32)
        vecs_l.append(vecs)

    wdec = np.zeros((D_PAD, NTOK_PAD), np.float32)
    wdec[:d, :ntoken] = np.asarray(raw["dec_w"], np.float32).T
    bdec = np.zeros((1, NTOK_PAD), np.float32)
    bdec[0, :ntoken] = np.asarray(raw["dec_b"], np.float32)

    return {
        "emb": jnp.asarray(emb_p, jnp.bfloat16),
        "pe": jnp.asarray(pe_p, jnp.float32),
        "wqkv": jnp.asarray(np.stack(wqkv_l), jnp.bfloat16),
        "bqkv": jnp.asarray(np.stack(bqkv_l), jnp.float32),
        "wo": jnp.asarray(np.stack(wo_l), jnp.bfloat16),
        "w1": jnp.asarray(np.stack(w1_l), jnp.bfloat16),
        "b1": jnp.asarray(np.stack(b1_l), jnp.float32),
        "w2": jnp.asarray(np.stack(w2_l), jnp.bfloat16),
        "vecs": jnp.asarray(np.stack(vecs_l), jnp.float32),
        "wdec": jnp.asarray(wdec, jnp.bfloat16),
        "bdec": jnp.asarray(bdec, jnp.float32),
    }


if __name__ == "__main__":
    # small shapes consistent with the module (nhead=2, nlayers=2, d_hid=200)
    ntoken, d_model, nhead, d_hid, nlayers = 48, 32, 2, 200, 2
    S, B = 8, 2

    key = jax.random.PRNGKey(0)
    pkey, skey = jax.random.split(key)
    raw = init_params_torch(pkey, ntoken, d_model, d_hid, nlayers, max_len=64)
    prep = prepare_params(raw, d_model=d_model, nhead=nhead)

    src = jax.random.randint(skey, (S, B), 0, ntoken, dtype=jnp.int32)
    # causal additive float mask (generate_square_subsequent_mask); -1e9 for -inf
    src_mask = jnp.where(jnp.arange(S)[None, :] <= jnp.arange(S)[:, None],
                         0.0, -1e9).astype(jnp.float32)

    fwd = jax.jit(functools.partial(transformer_forward,
                                    d_model=d_model, nhead=nhead, ntoken=ntoken))
    out = jax.block_until_ready(fwd(src, src_mask, prep))
    assert out.shape == (S, B, ntoken) and out.dtype == jnp.float32
    print("KERNEL_OK")
</pallas_src>

<mosaic_0001>
module attributes {stable_mosaic.version = 11 : i64} {
  func.func @_fused_forward_kernel(%arg0: i32, %arg1: memref<16x1xi32, #tpu.memory_space<vmem>>, %arg2: memref<128x128xbf16, #tpu.memory_space<vmem>>, %arg3: memref<16x128xf32, #tpu.memory_space<vmem>>, %arg4: memref<16x16xf32, #tpu.memory_space<vmem>>, %arg5: memref<2x128x768xbf16, #tpu.memory_space<vmem>>, %arg6: memref<2x1x768xf32, #tpu.memory_space<vmem>>, %arg7: memref<2x256x128xbf16, #tpu.memory_space<vmem>>, %arg8: memref<2x128x256xbf16, #tpu.memory_space<vmem>>, %arg9: memref<2x1x256xf32, #tpu.memory_space<vmem>>, %arg10: memref<2x256x128xbf16, #tpu.memory_space<vmem>>, %arg11: memref<2x8x128xf32, #tpu.memory_space<vmem>>, %arg12: memref<128x128xbf16, #tpu.memory_space<vmem>>, %arg13: memref<1x128xf32, #tpu.memory_space<vmem>>, %arg14: memref<16x128xf32, #tpu.memory_space<vmem>>) attributes {dimension_semantics = [#tpu.dimension_semantics<arbitrary>], iteration_bounds = array<i64: 1>, scalar_prefetch = 0 : i64, scratch_operands = 0 : i64, tpu.core_type = #tpu.core_type<tc>, window_params = [{pipeline_mode = #tpu.pipeline_mode<synchronous>, transform_indices = @transform_0, window_bounds = array<i64: 16, 1>}, {pipeline_mode = #tpu.pipeline_mode<synchronous>, transform_indices = @transform_1, window_bounds = array<i64: 128, 128>}, {pipeline_mode = #tpu.pipeline_mode<synchronous>, transform_indices = @transform_2, window_bounds = array<i64: 16, 128>}, {pipeline_mode = #tpu.pipeline_mode<synchronous>, transform_indices = @transform_3, window_bounds = array<i64: 16, 16>}, {pipeline_mode = #tpu.pipeline_mode<synchronous>, transform_indices = @transform_4, window_bounds = array<i64: 2, 128, 768>}, {pipeline_mode = #tpu.pipeline_mode<synchronous>, transform_indices = @transform_5, window_bounds = array<i64: 2, 1, 768>}, {pipeline_mode = #tpu.pipeline_mode<synchronous>, transform_indices = @transform_6, window_bounds = array<i64: 2, 256, 128>}, {pipeline_mode = #tpu.pipeline_mode<synchronous>, transform_indices = @transform_7, window_bounds = array<i64: 2, 128, 256>}, {pipeline_mode = #tpu.pipeline_mode<synchronous>, transform_indices = @transform_8, window_bounds = array<i64: 2, 1, 256>}, {pipeline_mode = #tpu.pipeline_mode<synchronous>, transform_indices = @transform_9, window_bounds = array<i64: 2, 256, 128>}, {pipeline_mode = #tpu.pipeline_mode<synchronous>, transform_indices = @transform_10, window_bounds = array<i64: 2, 8, 128>}, {pipeline_mode = #tpu.pipeline_mode<synchronous>, transform_indices = @transform_11, window_bounds = array<i64: 128, 128>}, {pipeline_mode = #tpu.pipeline_mode<synchronous>, transform_indices = @transform_12, window_bounds = array<i64: 1, 128>}, {pipeline_mode = #tpu.pipeline_mode<synchronous>, transform_indices = @transform_13, window_bounds = array<i64: 16, 128>}]} {
    %c0 = arith.constant 0 : index
    %c0_0 = arith.constant 0 : index
    %0 = vector.load %arg1[%c0, %c0_0] : memref<16x1xi32, #tpu.memory_space<vmem>>, vector<16x1xi32>
    %1 = tpu.iota {dimensions = array<i32: 1>} : vector<16x128xi32>
    %2 = vector.broadcast %0 : vector<16x1xi32> to vector<16x128xi32>
    %3 = arith.cmpi eq, %1, %2 : vector<16x128xi32>
    %cst = arith.constant 1.000000e+00 : f32
    %cst_1 = arith.constant 0.000000e+00 : f32
    %4 = vector.broadcast %cst : f32 to vector<16x128xf32>
    %5 = vector.broadcast %cst_1 : f32 to vector<16x128xf32>
    %6 = arith.select %3, %4, %5 : vector<16x128xi1>, vector<16x128xf32>
    %7 = arith.truncf %6 : vector<16x128xf32> to vector<16x128xbf16>
    %c0_2 = arith.constant 0 : index
    %c0_3 = arith.constant 0 : index
    %8 = vector.load %arg2[%c0_2, %c0_3] : memref<128x128xbf16, #tpu.memory_space<vmem>>, vector<128x128xbf16>
    %cst_4 = arith.constant dense<0.000000e+00> : vector<16x128xf32>
    %9 = tpu.matmul %7, %8, %cst_4 {dimension_numbers = #tpu.dot_dimension_numbers<[1], [0], [0], [1], [0, 0, 1, 1], [], []>} : vector<16x128xbf16>, vector<128x128xbf16>, vector<16x128xf32> -> vector<16x128xf32>
    %c0_5 = arith.constant 0 : index
    %c0_6 = arith.constant 0 : index
    %10 = vector.load %arg3[%c0_5, %c0_6] : memref<16x128xf32, #tpu.memory_space<vmem>>, vector<16x128xf32>
    %11 = arith.addf %9, %10 : vector<16x128xf32>
    %12 = tpu.iota {dimensions = array<i32: 1>} : vector<1x128xi32>
    %c32_i32 = arith.constant 32 : i32
    %13 = vector.broadcast %c32_i32 : i32 to vector<1x128xi32>
    %14 = arith.cmpi slt, %12, %13 : vector<1x128xi32>
    %15 = arith.extui %14 : vector<1x128xi1> to vector<1x128xi32>
    %16 = arith.sitofp %15 : vector<1x128xi32> to vector<1x128xf32>
    %c0_7 = arith.constant 0 : index
    %c0_8 = arith.constant 0 : index
    %17 = vector.load %arg4[%c0_7, %c0_8] : memref<16x16xf32, #tpu.memory_space<vmem>>, vector<16x16xf32>
    %c0_9 = arith.constant 0 : index
    %c0_10 = arith.constant 0 : index
    %c0_11 = arith.constant 0 : index
    %18 = vector.load %arg5[%c0_9, %c0_10, %c0_11] : memref<2x128x768xbf16, #tpu.memory_space<vmem>>, vector<1x128x768xbf16>
    %19 = vector.shape_cast %18 : vector<1x128x768xbf16> to vector<128x768xbf16>
    %c0_12 = arith.constant 0 : index
    %c0_13 = arith.constant 0 : index
    %c0_14 = arith.constant 0 : index
    %20 = vector.load %arg6[%c0_12, %c0_13, %c0_14] : memref<2x1x768xf32, #tpu.memory_space<vmem>>, vector<1x1x768xf32>
    %21 = vector.shape_cast %20 : vector<1x1x768xf32> to vector<1x768xf32>
    %c0_15 = arith.constant 0 : index
    %c0_16 = arith.constant 0 : index
    %c0_17 = arith.constant 0 : index
    %22 = vector.load %arg7[%c0_15, %c0_16, %c0_17] : memref<2x256x128xbf16, #tpu.memory_space<vmem>>, vector<1x256x128xbf16>
    %23 = vector.shape_cast %22 : vector<1x256x128xbf16> to vector<256x128xbf16>
    %c0_18 = arith.constant 0 : index
    %c0_19 = arith.constant 0 : index
    %c0_20 = arith.constant 0 : index
    %24 = vector.load %arg8[%c0_18, %c0_19, %c0_20] : memref<2x128x256xbf16, #tpu.memory_space<vmem>>, vector<1x128x256xbf16>
    %25 = vector.shape_cast %24 : vector<1x128x256xbf16> to vector<128x256xbf16>
    %c0_21 = arith.constant 0 : index
    %c0_22 = arith.constant 0 : index
    %c0_23 = arith.constant 0 : index
    %26 = vector.load %arg9[%c0_21, %c0_22, %c0_23] : memref<2x1x256xf32, #tpu.memory_space<vmem>>, vector<1x1x256xf32>
    %27 = vector.shape_cast %26 : vector<1x1x256xf32> to vector<1x256xf32>
    %c0_24 = arith.constant 0 : index
    %c0_25 = arith.constant 0 : index
    %c0_26 = arith.constant 0 : index
    %28 = vector.load %arg10[%c0_24, %c0_25, %c0_26] : memref<2x256x128xbf16, #tpu.memory_space<vmem>>, vector<1x256x128xbf16>
    %29 = vector.shape_cast %28 : vector<1x256x128xbf16> to vector<256x128xbf16>
    %c0_27 = arith.constant 0 : index
    %c0_28 = arith.constant 0 : index
    %c0_29 = arith.constant 0 : index
    %30 = vector.load %arg11[%c0_27, %c0_28, %c0_29] : memref<2x8x128xf32, #tpu.memory_space<vmem>>, vector<1x8x128xf32>
    %31 = vector.shape_cast %30 : vector<1x8x128xf32> to vector<8x128xf32>
    %32 = vector.extract_strided_slice %31 {offsets = [0, 0], sizes = [1, 128], strides = [1, 1]} : vector<8x128xf32> to vector<1x128xf32>
    %33 = vector.extract_strided_slice %31 {offsets = [1, 0], sizes = [1, 128], strides = [1, 1]} : vector<8x128xf32> to vector<1x128xf32>
    %34 = vector.extract_strided_slice %31 {offsets = [2, 0], sizes = [1, 128], strides = [1, 1]} : vector<8x128xf32> to vector<1x128xf32>
    %35 = vector.extract_strided_slice %31 {offsets = [3, 0], sizes = [1, 128], strides = [1, 1]} : vector<8x128xf32> to vector<1x128xf32>
    %36 = vector.extract_strided_slice %31 {offsets = [4, 0], sizes = [1, 128], strides = [1, 1]} : vector<8x128xf32> to vector<1x128xf32>
    %37 = vector.extract_strided_slice %31 {offsets = [5, 0], sizes = [1, 128], strides = [1, 1]} : vector<8x128xf32> to vector<1x128xf32>
    %38 = arith.truncf %11 : vector<16x128xf32> to vector<16x128xbf16>
    %cst_30 = arith.constant dense<0.000000e+00> : vector<16x768xf32>
    %39 = tpu.matmul %38, %19, %cst_30 {dimension_numbers = #tpu.dot_dimension_numbers<[1], [0], [0], [1], [0, 0, 1, 1], [], []>} : vector<16x128xbf16>, vector<128x768xbf16>, vector<16x768xf32> -> vector<16x768xf32>
    %40 = vector.broadcast %21 : vector<1x768xf32> to vector<16x768xf32>
    %41 = arith.addf %39, %40 : vector<16x768xf32>
    %42 = vector.extract_strided_slice %41 {offsets = [0, 0], sizes = [16, 128], strides = [1, 1]} : vector<16x768xf32> to vector<16x128xf32>
    %43 = arith.truncf %42 : vector<16x128xf32> to vector<16x128xbf16>
    %44 = vector.extract_strided_slice %41 {offsets = [0, 256], sizes = [16, 128], strides = [1, 1]} : vector<16x768xf32> to vector<16x128xf32>
    %45 = arith.truncf %44 : vector<16x128xf32> to vector<16x128xbf16>
    %46 = vector.extract_strided_slice %41 {offsets = [0, 512], sizes = [16, 128], strides = [1, 1]} : vector<16x768xf32> to vector<16x128xf32>
    %47 = arith.truncf %46 : vector<16x128xf32> to vector<16x128xbf16>
    %cst_31 = arith.constant dense<0.000000e+00> : vector<16x16xf32>
    %48 = tpu.matmul %43, %45, %cst_31 {dimension_numbers = #tpu.dot_dimension_numbers<[1], [1], [0], [0], [0, 0, 1, 0], [], []>} : vector<16x128xbf16>, vector<16x128xbf16>, vector<16x16xf32> -> vector<16x16xf32>
    %49 = arith.addf %48, %17 : vector<16x16xf32>
    %cst_32 = arith.constant dense<0xFF800000> : vector<16xf32>
    %50 = vector.multi_reduction <maximumf>, %49, %cst_32 [1] : vector<16x16xf32> to vector<16xf32>
    %51 = vector.shape_cast %50 : vector<16xf32> to vector<16x1xf32>
    %52 = vector.broadcast %51 : vector<16x1xf32> to vector<16x16xf32>
    %53 = arith.subf %49, %52 : vector<16x16xf32>
    %54 = math.exp %53 : vector<16x16xf32>
    %cst_33 = arith.constant dense<0.000000e+00> : vector<16xf32>
    %55 = vector.multi_reduction <add>, %54, %cst_33 [1] : vector<16x16xf32> to vector<16xf32>
    %56 = vector.shape_cast %55 : vector<16xf32> to vector<16x1xf32>
    %57 = tpu.reciprocal %56 {approx = true} : vector<16x1xf32> -> vector<16x1xf32>
    %58 = vector.broadcast %57 : vector<16x1xf32> to vector<16x16xf32>
    %59 = arith.mulf %54, %58 : vector<16x16xf32>
    %60 = arith.truncf %59 : vector<16x16xf32> to vector<16x16xbf16>
    %cst_34 = arith.constant dense<0.000000e+00> : vector<16x128xf32>
    %61 = tpu.matmul %60, %47, %cst_34 {dimension_numbers = #tpu.dot_dimension_numbers<[1], [0], [0], [1], [0, 0, 1, 1], [], []>} : vector<16x16xbf16>, vector<16x128xbf16>, vector<16x128xf32> -> vector<16x128xf32>
    %62 = vector.extract_strided_slice %41 {offsets = [0, 128], sizes = [16, 128], strides = [1, 1]} : vector<16x768xf32> to vector<16x128xf32>
    %63 = arith.truncf %62 : vector<16x128xf32> to vector<16x128xbf16>
    %64 = vector.extract_strided_slice %41 {offsets = [0, 384], sizes = [16, 128], strides = [1, 1]} : vector<16x768xf32> to vector<16x128xf32>
    %65 = arith.truncf %64 : vector<16x128xf32> to vector<16x128xbf16>
    %66 = vector.extract_strided_slice %41 {offsets = [0, 640], sizes = [16, 128], strides = [1, 1]} : vector<16x768xf32> to vector<16x128xf32>
    %67 = arith.truncf %66 : vector<16x128xf32> to vector<16x128xbf16>
    %cst_35 = arith.constant dense<0.000000e+00> : vector<16x16xf32>
    %68 = tpu.matmul %63, %65, %cst_35 {dimension_numbers = #tpu.dot_dimension_numbers<[1], [1], [0], [0], [0, 0, 1, 0], [], []>} : vector<16x128xbf16>, vector<16x128xbf16>, vector<16x16xf32> -> vector<16x16xf32>
    %69 = arith.addf %68, %17 : vector<16x16xf32>
    %cst_36 = arith.constant dense<0xFF800000> : vector<16xf32>
    %70 = vector.multi_reduction <maximumf>, %69, %cst_36 [1] : vector<16x16xf32> to vector<16xf32>
    %71 = vector.shape_cast %70 : vector<16xf32> to vector<16x1xf32>
    %72 = vector.broadcast %71 : vector<16x1xf32> to vector<16x16xf32>
    %73 = arith.subf %69, %72 : vector<16x16xf32>
    %74 = math.exp %73 : vector<16x16xf32>
    %cst_37 = arith.constant dense<0.000000e+00> : vector<16xf32>
    %75 = vector.multi_reduction <add>, %74, %cst_37 [1] : vector<16x16xf32> to vector<16xf32>
    %76 = vector.shape_cast %75 : vector<16xf32> to vector<16x1xf32>
    %77 = tpu.reciprocal %76 {approx = true} : vector<16x1xf32> -> vector<16x1xf32>
    %78 = vector.broadcast %77 : vector<16x1xf32> to vector<16x16xf32>
    %79 = arith.mulf %74, %78 : vector<16x16xf32>
    %80 = arith.truncf %79 : vector<16x16xf32> to vector<16x16xbf16>
    %cst_38 = arith.constant dense<0.000000e+00> : vector<16x128xf32>
    %81 = tpu.matmul %80, %67, %cst_38 {dimension_numbers = #tpu.dot_dimension_numbers<[1], [0], [0], [1], [0, 0, 1, 1], [], []>} : vector<16x16xbf16>, vector<16x128xbf16>, vector<16x128xf32> -> vector<16x128xf32>
    %82 = tpu.concatenate %61, %81 in 1 : vector<16x128xf32>, vector<16x128xf32> -> vector<16x256xf32>
    %83 = arith.truncf %82 : vector<16x256xf32> to vector<16x256xbf16>
    %cst_39 = arith.constant dense<0.000000e+00> : vector<16x128xf32>
    %84 = tpu.matmul %83, %23, %cst_39 {dimension_numbers = #tpu.dot_dimension_numbers<[1], [0], [0], [1], [0, 0, 1, 1], [], []>} : vector<16x256xbf16>, vector<256x128xbf16>, vector<16x128xf32> -> vector<16x128xf32>
    %85 = vector.broadcast %32 : vector<1x128xf32> to vector<16x128xf32>
    %86 = arith.addf %84, %85 : vector<16x128xf32>
    %87 = arith.addf %11, %86 : vector<16x128xf32>
    %cst_40 = arith.constant dense<0.000000e+00> : vector<16xf32>
    %88 = vector.multi_reduction <add>, %87, %cst_40 [1] : vector<16x128xf32> to vector<16xf32>
    %89 = vector.shape_cast %88 : vector<16xf32> to vector<16x1xf32>
    %cst_41 = arith.constant 3.125000e-02 : f32
    %90 = vector.broadcast %cst_41 : f32 to vector<16x1xf32>
    %91 = arith.mulf %89, %90 : vector<16x1xf32>
    %92 = vector.broadcast %91 : vector<16x1xf32> to vector<16x128xf32>
    %93 = arith.subf %87, %92 : vector<16x128xf32>
    %94 = vector.broadcast %16 : vector<1x128xf32> to vector<16x128xf32>
    %95 = arith.mulf %93, %94 : vector<16x128xf32>
    %96 = arith.mulf %95, %95 : vector<16x128xf32>
    %cst_42 = arith.constant dense<0.000000e+00> : vector<16xf32>
    %97 = vector.multi_reduction <add>, %96, %cst_42 [1] : vector<16x128xf32> to vector<16xf32>
    %98 = vector.shape_cast %97 : vector<16xf32> to vector<16x1xf32>
    %cst_43 = arith.constant 3.125000e-02 : f32
    %99 = vector.broadcast %cst_43 : f32 to vector<16x1xf32>
    %100 = arith.mulf %98, %99 : vector<16x1xf32>
    %cst_44 = arith.constant 9.99999974E-6 : f32
    %101 = vector.broadcast %cst_44 : f32 to vector<16x1xf32>
    %102 = arith.addf %100, %101 : vector<16x1xf32>
    %103 = math.rsqrt %102 : vector<16x1xf32>
    %104 = vector.broadcast %103 : vector<16x1xf32> to vector<16x128xf32>
    %105 = arith.mulf %95, %104 : vector<16x128xf32>
    %106 = vector.broadcast %33 : vector<1x128xf32> to vector<16x128xf32>
    %107 = arith.mulf %105, %106 : vector<16x128xf32>
    %108 = vector.broadcast %34 : vector<1x128xf32> to vector<16x128xf32>
    %109 = arith.addf %107, %108 : vector<16x128xf32>
    %110 = arith.truncf %109 : vector<16x128xf32> to vector<16x128xbf16>
    %cst_45 = arith.constant dense<0.000000e+00> : vector<16x256xf32>
    %111 = tpu.matmul %110, %25, %cst_45 {dimension_numbers = #tpu.dot_dimension_numbers<[1], [0], [0], [1], [0, 0, 1, 1], [], []>} : vector<16x128xbf16>, vector<128x256xbf16>, vector<16x256xf32> -> vector<16x256xf32>
    %112 = vector.broadcast %27 : vector<1x256xf32> to vector<16x256xf32>
    %113 = arith.addf %111, %112 : vector<16x256xf32>
    %cst_46 = arith.constant 0.000000e+00 : f32
    %114 = vector.broadcast %cst_46 : f32 to vector<16x256xf32>
    %115 = arith.maximumf %113, %114 : vector<16x256xf32>
    %116 = arith.truncf %115 : vector<16x256xf32> to vector<16x256xbf16>
    %cst_47 = arith.constant dense<0.000000e+00> : vector<16x128xf32>
    %117 = tpu.matmul %116, %29, %cst_47 {dimension_numbers = #tpu.dot_dimension_numbers<[1], [0], [0], [1], [0, 0, 1, 1], [], []>} : vector<16x256xbf16>, vector<256x128xbf16>, vector<16x128xf32> -> vector<16x128xf32>
    %118 = vector.broadcast %35 : vector<1x128xf32> to vector<16x128xf32>
    %119 = arith.addf %117, %118 : vector<16x128xf32>
    %120 = arith.addf %109, %119 : vector<16x128xf32>
    %cst_48 = arith.constant dense<0.000000e+00> : vector<16xf32>
    %121 = vector.multi_reduction <add>, %120, %cst_48 [1] : vector<16x128xf32> to vector<16xf32>
    %122 = vector.shape_cast %121 : vector<16xf32> to vector<16x1xf32>
    %cst_49 = arith.constant 3.125000e-02 : f32
    %123 = vector.broadcast %cst_49 : f32 to vector<16x1xf32>
    %124 = arith.mulf %122, %123 : vector<16x1xf32>
    %125 = vector.broadcast %124 : vector<16x1xf32> to vector<16x128xf32>
    %126 = arith.subf %120, %125 : vector<16x128xf32>
    %127 = vector.broadcast %16 : vector<1x128xf32> to vector<16x128xf32>
    %128 = arith.mulf %126, %127 : vector<16x128xf32>
    %129 = arith.mulf %128, %128 : vector<16x128xf32>
    %cst_50 = arith.constant dense<0.000000e+00> : vector<16xf32>
    %130 = vector.multi_reduction <add>, %129, %cst_50 [1] : vector<16x128xf32> to vector<16xf32>
    %131 = vector.shape_cast %130 : vector<16xf32> to vector<16x1xf32>
    %cst_51 = arith.constant 3.125000e-02 : f32
    %132 = vector.broadcast %cst_51 : f32 to vector<16x1xf32>
    %133 = arith.mulf %131, %132 : vector<16x1xf32>
    %cst_52 = arith.constant 9.99999974E-6 : f32
    %134 = vector.broadcast %cst_52 : f32 to vector<16x1xf32>
    %135 = arith.addf %133, %134 : vector<16x1xf32>
    %136 = math.rsqrt %135 : vector<16x1xf32>
    %137 = vector.broadcast %136 : vector<16x1xf32> to vector<16x128xf32>
    %138 = arith.mulf %128, %137 : vector<16x128xf32>
    %139 = vector.broadcast %36 : vector<1x128xf32> to vector<16x128xf32>
    %140 = arith.mulf %138, %139 : vector<16x128xf32>
    %141 = vector.broadcast %37 : vector<1x128xf32> to vector<16x128xf32>
    %142 = arith.addf %140, %141 : vector<16x128xf32>
    %c1 = arith.constant 1 : index
    %c0_53 = arith.constant 0 : index
    %c0_54 = arith.constant 0 : index
    %143 = vector.load %arg5[%c1, %c0_53, %c0_54] : memref<2x128x768xbf16, #tpu.memory_space<vmem>>, vector<1x128x768xbf16>
    %144 = vector.shape_cast %143 : vector<1x128x768xbf16> to vector<128x768xbf16>
    %c1_55 = arith.constant 1 : index
    %c0_56 = arith.constant 0 : index
    %c0_57 = arith.constant 0 : index
    %145 = vector.load %arg6[%c1_55, %c0_56, %c0_57] : memref<2x1x768xf32, #tpu.memory_space<vmem>>, vector<1x1x768xf32>
    %146 = vector.shape_cast %145 : vector<1x1x768xf32> to vector<1x768xf32>
    %c1_58 = arith.constant 1 : index
    %c0_59 = arith.constant 0 : index
    %c0_60 = arith.constant 0 : index
    %147 = vector.load %arg7[%c1_58, %c0_59, %c0_60] : memref<2x256x128xbf16, #tpu.memory_space<vmem>>, vector<1x256x128xbf16>
    %148 = vector.shape_cast %147 : vector<1x256x128xbf16> to vector<256x128xbf16>
    %c1_61 = arith.constant 1 : index
    %c0_62 = arith.constant 0 : index
    %c0_63 = arith.constant 0 : index
    %149 = vector.load %arg8[%c1_61, %c0_62, %c0_63] : memref<2x128x256xbf16, #tpu.memory_space<vmem>>, vector<1x128x256xbf16>
    %150 = vector.shape_cast %149 : vector<1x128x256xbf16> to vector<128x256xbf16>
    %c1_64 = arith.constant 1 : index
    %c0_65 = arith.constant 0 : index
    %c0_66 = arith.constant 0 : index
    %151 = vector.load %arg9[%c1_64, %c0_65, %c0_66] : memref<2x1x256xf32, #tpu.memory_space<vmem>>, vector<1x1x256xf32>
    %152 = vector.shape_cast %151 : vector<1x1x256xf32> to vector<1x256xf32>
    %c1_67 = arith.constant 1 : index
    %c0_68 = arith.constant 0 : index
    %c0_69 = arith.constant 0 : index
    %153 = vector.load %arg10[%c1_67, %c0_68, %c0_69] : memref<2x256x128xbf16, #tpu.memory_space<vmem>>, vector<1x256x128xbf16>
    %154 = vector.shape_cast %153 : vector<1x256x128xbf16> to vector<256x128xbf16>
    %c1_70 = arith.constant 1 : index
    %c0_71 = arith.constant 0 : index
    %c0_72 = arith.constant 0 : index
    %155 = vector.load %arg11[%c1_70, %c0_71, %c0_72] : memref<2x8x128xf32, #tpu.memory_space<vmem>>, vector<1x8x128xf32>
    %156 = vector.shape_cast %155 : vector<1x8x128xf32> to vector<8x128xf32>
    %157 = vector.extract_strided_slice %156 {offsets = [0, 0], sizes = [1, 128], strides = [1, 1]} : vector<8x128xf32> to vector<1x128xf32>
    %158 = vector.extract_strided_slice %156 {offsets = [1, 0], sizes = [1, 128], strides = [1, 1]} : vector<8x128xf32> to vector<1x128xf32>
    %159 = vector.extract_strided_slice %156 {offsets = [2, 0], sizes = [1, 128], strides = [1, 1]} : vector<8x128xf32> to vector<1x128xf32>
    %160 = vector.extract_strided_slice %156 {offsets = [3, 0], sizes = [1, 128], strides = [1, 1]} : vector<8x128xf32> to vector<1x128xf32>
    %161 = vector.extract_strided_slice %156 {offsets = [4, 0], sizes = [1, 128], strides = [1, 1]} : vector<8x128xf32> to vector<1x128xf32>
    %162 = vector.extract_strided_slice %156 {offsets = [5, 0], sizes = [1, 128], strides = [1, 1]} : vector<8x128xf32> to vector<1x128xf32>
    %163 = arith.truncf %142 : vector<16x128xf32> to vector<16x128xbf16>
    %cst_73 = arith.constant dense<0.000000e+00> : vector<16x768xf32>
    %164 = tpu.matmul %163, %144, %cst_73 {dimension_numbers = #tpu.dot_dimension_numbers<[1], [0], [0], [1], [0, 0, 1, 1], [], []>} : vector<16x128xbf16>, vector<128x768xbf16>, vector<16x768xf32> -> vector<16x768xf32>
    %165 = vector.broadcast %146 : vector<1x768xf32> to vector<16x768xf32>
    %166 = arith.addf %164, %165 : vector<16x768xf32>
    %167 = vector.extract_strided_slice %166 {offsets = [0, 0], sizes = [16, 128], strides = [1, 1]} : vector<16x768xf32> to vector<16x128xf32>
    %168 = arith.truncf %167 : vector<16x128xf32> to vector<16x128xbf16>
    %169 = vector.extract_strided_slice %166 {offsets = [0, 256], sizes = [16, 128], strides = [1, 1]} : vector<16x768xf32> to vector<16x128xf32>
    %170 = arith.truncf %169 : vector<16x128xf32> to vector<16x128xbf16>
    %171 = vector.extract_strided_slice %166 {offsets = [0, 512], sizes = [16, 128], strides = [1, 1]} : vector<16x768xf32> to vector<16x128xf32>
    %172 = arith.truncf %171 : vector<16x128xf32> to vector<16x128xbf16>
    %cst_74 = arith.constant dense<0.000000e+00> : vector<16x16xf32>
    %173 = tpu.matmul %168, %170, %cst_74 {dimension_numbers = #tpu.dot_dimension_numbers<[1], [1], [0], [0], [0, 0, 1, 0], [], []>} : vector<16x128xbf16>, vector<16x128xbf16>, vector<16x16xf32> -> vector<16x16xf32>
    %174 = arith.addf %173, %17 : vector<16x16xf32>
    %cst_75 = arith.constant dense<0xFF800000> : vector<16xf32>
    %175 = vector.multi_reduction <maximumf>, %174, %cst_75 [1] : vector<16x16xf32> to vector<16xf32>
    %176 = vector.shape_cast %175 : vector<16xf32> to vector<16x1xf32>
    %177 = vector.broadcast %176 : vector<16x1xf32> to vector<16x16xf32>
    %178 = arith.subf %174, %177 : vector<16x16xf32>
    %179 = math.exp %178 : vector<16x16xf32>
    %cst_76 = arith.constant dense<0.000000e+00> : vector<16xf32>
    %180 = vector.multi_reduction <add>, %179, %cst_76 [1] : vector<16x16xf32> to vector<16xf32>
    %181 = vector.shape_cast %180 : vector<16xf32> to vector<16x1xf32>
    %182 = tpu.reciprocal %181 {approx = true} : vector<16x1xf32> -> vector<16x1xf32>
    %183 = vector.broadcast %182 : vector<16x1xf32> to vector<16x16xf32>
    %184 = arith.mulf %179, %183 : vector<16x16xf32>
    %185 = arith.truncf %184 : vector<16x16xf32> to vector<16x16xbf16>
    %cst_77 = arith.constant dense<0.000000e+00> : vector<16x128xf32>
    %186 = tpu.matmul %185, %172, %cst_77 {dimension_numbers = #tpu.dot_dimension_numbers<[1], [0], [0], [1], [0, 0, 1, 1], [], []>} : vector<16x16xbf16>, vector<16x128xbf16>, vector<16x128xf32> -> vector<16x128xf32>
    %187 = vector.extract_strided_slice %166 {offsets = [0, 128], sizes = [16, 128], strides = [1, 1]} : vector<16x768xf32> to vector<16x128xf32>
    %188 = arith.truncf %187 : vector<16x128xf32> to vector<16x128xbf16>
    %189 = vector.extract_strided_slice %166 {offsets = [0, 384], sizes = [16, 128], strides = [1, 1]} : vector<16x768xf32> to vector<16x128xf32>
    %190 = arith.truncf %189 : vector<16x128xf32> to vector<16x128xbf16>
    %191 = vector.extract_strided_slice %166 {offsets = [0, 640], sizes = [16, 128], strides = [1, 1]} : vector<16x768xf32> to vector<16x128xf32>
    %192 = arith.truncf %191 : vector<16x128xf32> to vector<16x128xbf16>
    %cst_78 = arith.constant dense<0.000000e+00> : vector<16x16xf32>
    %193 = tpu.matmul %188, %190, %cst_78 {dimension_numbers = #tpu.dot_dimension_numbers<[1], [1], [0], [0], [0, 0, 1, 0], [], []>} : vector<16x128xbf16>, vector<16x128xbf16>, vector<16x16xf32> -> vector<16x16xf32>
    %194 = arith.addf %193, %17 : vector<16x16xf32>
    %cst_79 = arith.constant dense<0xFF800000> : vector<16xf32>
    %195 = vector.multi_reduction <maximumf>, %194, %cst_79 [1] : vector<16x16xf32> to vector<16xf32>
    %196 = vector.shape_cast %195 : vector<16xf32> to vector<16x1xf32>
    %197 = vector.broadcast %196 : vector<16x1xf32> to vector<16x16xf32>
    %198 = arith.subf %194, %197 : vector<16x16xf32>
    %199 = math.exp %198 : vector<16x16xf32>
    %cst_80 = arith.constant dense<0.000000e+00> : vector<16xf32>
    %200 = vector.multi_reduction <add>, %199, %cst_80 [1] : vector<16x16xf32> to vector<16xf32>
    %201 = vector.shape_cast %200 : vector<16xf32> to vector<16x1xf32>
    %202 = tpu.reciprocal %201 {approx = true} : vector<16x1xf32> -> vector<16x1xf32>
    %203 = vector.broadcast %202 : vector<16x1xf32> to vector<16x16xf32>
    %204 = arith.mulf %199, %203 : vector<16x16xf32>
    %205 = arith.truncf %204 : vector<16x16xf32> to vector<16x16xbf16>
    %cst_81 = arith.constant dense<0.000000e+00> : vector<16x128xf32>
    %206 = tpu.matmul %205, %192, %cst_81 {dimension_numbers = #tpu.dot_dimension_numbers<[1], [0], [0], [1], [0, 0, 1, 1], [], []>} : vector<16x16xbf16>, vector<16x128xbf16>, vector<16x128xf32> -> vector<16x128xf32>
    %207 = tpu.concatenate %186, %206 in 1 : vector<16x128xf32>, vector<16x128xf32> -> vector<16x256xf32>
    %208 = arith.truncf %207 : vector<16x256xf32> to vector<16x256xbf16>
    %cst_82 = arith.constant dense<0.000000e+00> : vector<16x128xf32>
    %209 = tpu.matmul %208, %148, %cst_82 {dimension_numbers = #tpu.dot_dimension_numbers<[1], [0], [0], [1], [0, 0, 1, 1], [], []>} : vector<16x256xbf16>, vector<256x128xbf16>, vector<16x128xf32> -> vector<16x128xf32>
    %210 = vector.broadcast %157 : vector<1x128xf32> to vector<16x128xf32>
    %211 = arith.addf %209, %210 : vector<16x128xf32>
    %212 = arith.addf %142, %211 : vector<16x128xf32>
    %cst_83 = arith.constant dense<0.000000e+00> : vector<16xf32>
    %213 = vector.multi_reduction <add>, %212, %cst_83 [1] : vector<16x128xf32> to vector<16xf32>
    %214 = vector.shape_cast %213 : vector<16xf32> to vector<16x1xf32>
    %cst_84 = arith.constant 3.125000e-02 : f32
    %215 = vector.broadcast %cst_84 : f32 to vector<16x1xf32>
    %216 = arith.mulf %214, %215 : vector<16x1xf32>
    %217 = vector.broadcast %216 : vector<16x1xf32> to vector<16x128xf32>
    %218 = arith.subf %212, %217 : vector<16x128xf32>
    %219 = vector.broadcast %16 : vector<1x128xf32> to vector<16x128xf32>
    %220 = arith.mulf %218, %219 : vector<16x128xf32>
    %221 = arith.mulf %220, %220 : vector<16x128xf32>
    %cst_85 = arith.constant dense<0.000000e+00> : vector<16xf32>
    %222 = vector.multi_reduction <add>, %221, %cst_85 [1] : vector<16x128xf32> to vector<16xf32>
    %223 = vector.shape_cast %222 : vector<16xf32> to vector<16x1xf32>
    %cst_86 = arith.constant 3.125000e-02 : f32
    %224 = vector.broadcast %cst_86 : f32 to vector<16x1xf32>
    %225 = arith.mulf %223, %224 : vector<16x1xf32>
    %cst_87 = arith.constant 9.99999974E-6 : f32
    %226 = vector.broadcast %cst_87 : f32 to vector<16x1xf32>
    %227 = arith.addf %225, %226 : vector<16x1xf32>
    %228 = math.rsqrt %227 : vector<16x1xf32>
    %229 = vector.broadcast %228 : vector<16x1xf32> to vector<16x128xf32>
    %230 = arith.mulf %220, %229 : vector<16x128xf32>
    %231 = vector.broadcast %158 : vector<1x128xf32> to vector<16x128xf32>
    %232 = arith.mulf %230, %231 : vector<16x128xf32>
    %233 = vector.broadcast %159 : vector<1x128xf32> to vector<16x128xf32>
    %234 = arith.addf %232, %233 : vector<16x128xf32>
    %235 = arith.truncf %234 : vector<16x128xf32> to vector<16x128xbf16>
    %cst_88 = arith.constant dense<0.000000e+00> : vector<16x256xf32>
    %236 = tpu.matmul %235, %150, %cst_88 {dimension_numbers = #tpu.dot_dimension_numbers<[1], [0], [0], [1], [0, 0, 1, 1], [], []>} : vector<16x128xbf16>, vector<128x256xbf16>, vector<16x256xf32> -> vector<16x256xf32>
    %237 = vector.broadcast %152 : vector<1x256xf32> to vector<16x256xf32>
    %238 = arith.addf %236, %237 : vector<16x256xf32>
    %cst_89 = arith.constant 0.000000e+00 : f32
    %239 = vector.broadcast %cst_89 : f32 to vector<16x256xf32>
    %240 = arith.maximumf %238, %239 : vector<16x256xf32>
    %241 = arith.truncf %240 : vector<16x256xf32> to vector<16x256xbf16>
    %cst_90 = arith.constant dense<0.000000e+00> : vector<16x128xf32>
    %242 = tpu.matmul %241, %154, %cst_90 {dimension_numbers = #tpu.dot_dimension_numbers<[1], [0], [0], [1], [0, 0, 1, 1], [], []>} : vector<16x256xbf16>, vector<256x128xbf16>, vector<16x128xf32> -> vector<16x128xf32>
    %243 = vector.broadcast %160 : vector<1x128xf32> to vector<16x128xf32>
    %244 = arith.addf %242, %243 : vector<16x128xf32>
    %245 = arith.addf %234, %244 : vector<16x128xf32>
    %cst_91 = arith.constant dense<0.000000e+00> : vector<16xf32>
    %246 = vector.multi_reduction <add>, %245, %cst_91 [1] : vector<16x128xf32> to vector<16xf32>
    %247 = vector.shape_cast %246 : vector<16xf32> to vector<16x1xf32>
    %cst_92 = arith.constant 3.125000e-02 : f32
    %248 = vector.broadcast %cst_92 : f32 to vector<16x1xf32>
    %249 = arith.mulf %247, %248 : vector<16x1xf32>
    %250 = vector.broadcast %249 : vector<16x1xf32> to vector<16x128xf32>
    %251 = arith.subf %245, %250 : vector<16x128xf32>
    %252 = vector.broadcast %16 : vector<1x128xf32> to vector<16x128xf32>
    %253 = arith.mulf %251, %252 : vector<16x128xf32>
    %254 = arith.mulf %253, %253 : vector<16x128xf32>
    %cst_93 = arith.constant dense<0.000000e+00> : vector<16xf32>
    %255 = vector.multi_reduction <add>, %254, %cst_93 [1] : vector<16x128xf32> to vector<16xf32>
    %256 = vector.shape_cast %255 : vector<16xf32> to vector<16x1xf32>
    %cst_94 = arith.constant 3.125000e-02 : f32
    %257 = vector.broadcast %cst_94 : f32 to vector<16x1xf32>
    %258 = arith.mulf %256, %257 : vector<16x1xf32>
    %cst_95 = arith.constant 9.99999974E-6 : f32
    %259 = vector.broadcast %cst_95 : f32 to vector<16x1xf32>
    %260 = arith.addf %258, %259 : vector<16x1xf32>
    %261 = math.rsqrt %260 : vector<16x1xf32>
    %262 = vector.broadcast %261 : vector<16x1xf32> to vector<16x128xf32>
    %263 = arith.mulf %253, %262 : vector<16x128xf32>
    %264 = vector.broadcast %161 : vector<1x128xf32> to vector<16x128xf32>
    %265 = arith.mulf %263, %264 : vector<16x128xf32>
    %266 = vector.broadcast %162 : vector<1x128xf32> to vector<16x128xf32>
    %267 = arith.addf %265, %266 : vector<16x128xf32>
    %268 = arith.truncf %267 : vector<16x128xf32> to vector<16x128xbf16>
    %c0_96 = arith.constant 0 : index
    %c0_97 = arith.constant 0 : index
    %269 = vector.load %arg12[%c0_96, %c0_97] : memref<128x128xbf16, #tpu.memory_space<vmem>>, vector<128x128xbf16>
    %cst_98 = arith.constant dense<0.000000e+00> : vector<16x128xf32>
    %270 = tpu.matmul %268, %269, %cst_98 {dimension_numbers = #tpu.dot_dimension_numbers<[1], [0], [0], [1], [0, 0, 1, 1], [], []>} : vector<16x128xbf16>, vector<128x128xbf16>, vector<16x128xf32> -> vector<16x128xf32>
    %c0_99 = arith.constant 0 : index
    %c0_100 = arith.constant 0 : index
    %271 = vector.load %arg13[%c0_99, %c0_100] : memref<1x128xf32, #tpu.memory_space<vmem>>, vector<1x128xf32>
    %272 = vector.broadcast %271 : vector<1x128xf32> to vector<16x128xf32>
    %273 = arith.addf %270, %272 : vector<16x128xf32>
    %c0_101 = arith.constant 0 : index
    %c0_102 = arith.constant 0 : index
    %274 = vector.load %arg14[%c0_101, %c0_102] : memref<16x128xf32, #tpu.memory_space<vmem>>, vector<16x128xf32>
    tpu.vector_store %arg14[%c0_101, %c0_102], %273 {strides = array<i32>} : memref<16x128xf32, #tpu.memory_space<vmem>>, vector<16x128xf32>,
    return
  }
  func.func @transform_0(%arg0: i32) -> (i32, i32) {
    %c0_i32 = arith.constant 0 : i32
    %c0_i32_0 = arith.constant 0 : i32
    %c0_i32_1 = arith.constant 0 : i32
    return %c0_i32, %c0_i32_0 : i32, i32
  }
  func.func @transform_1(%arg0: i32) -> (i32, i32) {
    %c0_i32 = arith.constant 0 : i32
    %c0_i32_0 = arith.constant 0 : i32
    %c0_i32_1 = arith.constant 0 : i32
    return %c0_i32, %c0_i32_0 : i32, i32
  }
  func.func @transform_2(%arg0: i32) -> (i32, i32) {
    %c0_i32 = arith.constant 0 : i32
    %c0_i32_0 = arith.constant 0 : i32
    %c0_i32_1 = arith.constant 0 : i32
    return %c0_i32, %c0_i32_0 : i32, i32
  }
  func.func @transform_3(%arg0: i32) -> (i32, i32) {
    %c0_i32 = arith.constant 0 : i32
    %c0_i32_0 = arith.constant 0 : i32
    %c0_i32_1 = arith.constant 0 : i32
    return %c0_i32, %c0_i32_0 : i32, i32
  }
  func.func @transform_4(%arg0: i32) -> (i32, i32, i32) {
    %c0_i32 = arith.constant 0 : i32
    %c0_i32_0 = arith.constant 0 : i32
    %c0_i32_1 = arith.constant 0 : i32
    %c0_i32_2 = arith.constant 0 : i32
    return %c0_i32, %c0_i32_0, %c0_i32_1 : i32, i32, i32
  }
  func.func @transform_5(%arg0: i32) -> (i32, i32, i32) {
    %c0_i32 = arith.constant 0 : i32
    %c0_i32_0 = arith.constant 0 : i32
    %c0_i32_1 = arith.constant 0 : i32
    %c0_i32_2 = arith.constant 0 : i32
    return %c0_i32, %c0_i32_0, %c0_i32_1 : i32, i32, i32
  }
  func.func @transform_6(%arg0: i32) -> (i32, i32, i32) {
    %c0_i32 = arith.constant 0 : i32
    %c0_i32_0 = arith.constant 0 : i32
    %c0_i32_1 = arith.constant 0 : i32
    %c0_i32_2 = arith.constant 0 : i32
    return %c0_i32, %c0_i32_0, %c0_i32_1 : i32, i32, i32
  }
  func.func @transform_7(%arg0: i32) -> (i32, i32, i32) {
    %c0_i32 = arith.constant 0 : i32
    %c0_i32_0 = arith.constant 0 : i32
    %c0_i32_1 = arith.constant 0 : i32
    %c0_i32_2 = arith.constant 0 : i32
    return %c0_i32, %c0_i32_0, %c0_i32_1 : i32, i32, i32
  }
  func.func @transform_8(%arg0: i32) -> (i32, i32, i32) {
    %c0_i32 = arith.constant 0 : i32
    %c0_i32_0 = arith.constant 0 : i32
    %c0_i32_1 = arith.constant 0 : i32
    %c0_i32_2 = arith.constant 0 : i32
    return %c0_i32, %c0_i32_0, %c0_i32_1 : i32, i32, i32
  }
  func.func @transform_9(%arg0: i32) -> (i32, i32, i32) {
    %c0_i32 = arith.constant 0 : i32
    %c0_i32_0 = arith.constant 0 : i32
    %c0_i32_1 = arith.constant 0 : i32
    %c0_i32_2 = arith.constant 0 : i32
    return %c0_i32, %c0_i32_0, %c0_i32_1 : i32, i32, i32
  }
  func.func @transform_10(%arg0: i32) -> (i32, i32, i32) {
    %c0_i32 = arith.constant 0 : i32
    %c0_i32_0 = arith.constant 0 : i32
    %c0_i32_1 = arith.constant 0 : i32
    %c0_i32_2 = arith.constant 0 : i32
    return %c0_i32, %c0_i32_0, %c0_i32_1 : i32, i32, i32
  }
  func.func @transform_11(%arg0: i32) -> (i32, i32) {
    %c0_i32 = arith.constant 0 : i32
    %c0_i32_0 = arith.constant 0 : i32
    %c0_i32_1 = arith.constant 0 : i32
    return %c0_i32, %c0_i32_0 : i32, i32
  }
  func.func @transform_12(%arg0: i32) -> (i32, i32) {
    %c0_i32 = arith.constant 0 : i32
    %c0_i32_0 = arith.constant 0 : i32
    %c0_i32_1 = arith.constant 0 : i32
    return %c0_i32, %c0_i32_0 : i32, i32
  }
  func.func @transform_13(%arg0: i32) -> (i32, i32) {
    %c0_i32 = arith.constant 0 : i32
    %c0_i32_0 = arith.constant 0 : i32
    %c0_i32_1 = arith.constant 0 : i32
    return %c0_i32, %c0_i32_0 : i32, i32
  }
}

</mosaic_0001>

<bundles_post_ra>
// kernel: eq.8
= control target key start
LH: loop header
LB: loop body
LE: loop exit
PB: predicated region body
PF: predicated region fallthrough
CT: control target
= control target key end

     0   :  { %s69_s10 = smov 14   ;;  %s70_s11 = smov 10   ;;  %vm3_vm0 = vcmask 15360   ;;  %vm9_vm1 = vcmask 130160   ;;  %vm15_vm2 = vcmask 113760   ;;  %vm21_vm3 = vcmask 97360   ;;  %s113_s0 = inlined_call_operand.vmem [shape: s32[8,2], index: 0, kind: input, shape index: {}]   ;;  %s114_s1 = inlined_call_operand.vmem [shape: s32[16], index: 1, kind: output, shape index: {}]  }
   0x1   :  { %v55_v0 = vld [vmem:[%s113_s0 + $0x7] sm:$0x1]   ;;  %v57_v1 = vld [vmem:[%s113_s0 + $0x5] sm:$0x1]   ;;  %v56_v2 = vld [vmem:[%s113_s0 + $0x6] sm:$0x1]  }
   0x2   :  { %7 = vrot.lane.b32.xlu0 %v55_v0, %s69_s10  ;;  %19 = vrot.lane.b32.xlu1 %v57_v1, %s70_s11  ;;  %v58_v3 = vld [vmem:[%s113_s0 + $0x4] sm:$0x1]   ;;  %v2_v4 = vld [vmem:[%s113_s0] sm:$0x1]   ;;  %s71_s18 = smov 12   ;;  %s72_s19 = smov 8  }
   0x3   :  { %4 = vst.msk [vmem:[#allocation0] sm:$0x1] %vm3_vm0, %v2_v4   ;;  %v59_v5 = vld [vmem:[%s113_s0 + $0x3] sm:$0x1]   ;;  %v60_v6 = vld [vmem:[%s113_s0 + $0x2] sm:$0x1]  }
   0x4   :  { %s73_s24 = smov 6   ;;  %s74_s25 = smov 4   ;;  %v61_v7 = vld [vmem:[%s113_s0 + $0x1] sm:$0x1]   ;;  %vm27_vm4 = vcmask 80960   ;;  %vm33_vm5 = vcmask 64560  }
   0x5   :  { %s75_s0 = smov 2   ;;  %vm39_vm6 = vcmask 48160   ;;  %vm45_vm7 = vcmask 31760  }
   0x6   :  { %13 = vrot.lane.b32.xlu0 %v56_v2, %s71_s18  ;;  %25 = vrot.lane.b32.xlu1 %v58_v3, %s72_s19 }
   0xa   :  { %31 = vrot.lane.b32.xlu0 %v59_v5, %s73_s24  ;;  %37 = vrot.lane.b32.xlu1 %v60_v6, %s74_s25 }
   0xe   :  { %43 = vrot.lane.b32.xlu0 %v61_v7, %s75_s0 }
  0x74   :  { %v8_v8 = vpop.permute.xlu0 %7   ;;  %v20_v9 = vpop.permute.xlu1 %19  }
  0x75   :  { %10 = vst.msk [vmem:[#allocation0] sm:$0x1] %vm9_vm1, %v8_v8  }
  0x78   :  { %v14_v10 = vpop.permute.xlu0 %13   ;;  %v26_v11 = vpop.permute.xlu1 %25  }
  0x79   :  { %16 = vst.msk [vmem:[#allocation0] sm:$0x1] %vm15_vm2, %v14_v10  }
  0x7a   :  { %22 = vst.msk [vmem:[#allocation0] sm:$0x1] %vm21_vm3, %v20_v9  }
  0x7b   :  { %28 = vst.msk [vmem:[#allocation0] sm:$0x1] %vm27_vm4, %v26_v11  }
  0x7c   :  { %v32_v12 = vpop.permute.xlu0 %31   ;;  %v38_v13 = vpop.permute.xlu1 %37  }
  0x7d   :  { %34 = vst.msk [vmem:[#allocation0] sm:$0x1] %vm33_vm5, %v32_v12  }
  0x7e   :  { %40 = vst.msk [vmem:[#allocation0] sm:$0x1] %vm39_vm6, %v38_v13  }
  0x80   :  { %v44_v14 = vpop.permute.xlu0 %43  }
  0x81   :  { %46 = vst.msk [vmem:[#allocation0] sm:$0x1] %vm45_vm7, %v44_v14  }
  0x88   :  { %v51_v15 = vld [vmem:[#allocation0] sm:$0x1] }
  0x89   :  { %54 = vst [vmem:[%s114_s1] sm:$0x1] %v51_v15 }

// kernel: transformer_forward.1
= control target key start
LH: loop header
LB: loop body
LE: loop exit
PB: predicated region body
PF: predicated region fallthrough
CT: control target
= control target key end

     0   :  { %v3729_v1 = vmov 0   ;;  %v3730_v2 = vmov 0.0   ;;  %vm3731_vm0 = vmmov 0   ;;  %s4707_s0 = inlined_call_operand.vmem [shape: s32[16,1], index: 0, kind: input, shape index: {}]   ;;  %s4708_s1 = inlined_call_operand.vmem [shape: bf16[128,128], index: 1, kind: input, shape index: {}]   ;;  %s4709_s2 = inlined_call_operand.vmem [shape: f32[16,128], index: 2, kind: input, shape index: {}]   ;;  %s4710_s3 = inlined_call_operand.vmem [shape: f32[16,16], index: 3, kind: input, shape index: {}]   ;;  %s4711_s4 = inlined_call_operand.vmem [shape: bf16[2,128,768], index: 4, kind: input, shape index: {}]   ;;  %s4712_s5 = inlined_call_operand.vmem [shape: f32[2,1,768], index: 5, kind: input, shape index: {}]   ;;  %s4713_s6 = inlined_call_operand.vmem [shape: bf16[2,256,128], index: 6, kind: input, shape index: {}]   ;;  %s4714_s7 = inlined_call_operand.vmem [shape: bf16[2,128,256], index: 7, kind: input, shape index: {}]   ;;  %s4715_s8 = inlined_call_operand.vmem [shape: f32[2,1,256], index: 8, kind: input, shape index: {}]   ;;  %s4716_s9 = inlined_call_operand.vmem [shape: bf16[2,256,128], index: 9, kind: input, shape index: {}]   ;;  %s4717_s10 = inlined_call_operand.vmem [shape: f32[2,8,128], index: 10, kind: input, shape index: {}]   ;;  %s4718_s11 = inlined_call_operand.vmem [shape: bf16[128,128], index: 11, kind: input, shape index: {}]   ;;  %s4719_s12 = inlined_call_operand.vmem [shape: f32[1,128], index: 12, kind: input, shape index: {}]   ;;  %s4720_s13 = inlined_call_operand.hbm [shape: f32[16,128], index: 13, kind: output, shape index: {}]  }
   0x1   :  { %v46_v0 = vld [vmem:[%s4707_s0] sm:$0xff]  ;;  %3386 = vset.pattern.permute.xlu0 %v3729_v1  ;;  %3291 = vmatprep.subr.bf16.mxu0 %v3730_v2  ;;  %v3387_v3 = vld [vmem:[%s4708_s1 + $0x38] sm:$0xff]   ;;  %v47_v4 = vld [vmem:[%s4707_s0 + $0x8] sm:$0xff] }
   0x2   :  { %51 = vperm.xlu0 %3386, %v46_v0   ;;  %608 = vmatprep.mubr.bf16.mxu1 %v3729_v1  ;;  %v3388_v5 = vld [vmem:[%s4708_s1 + $0x30] sm:$0xff]   ;;  %v3389_v6 = vld [vmem:[%s4708_s1 + $0x28] sm:$0xff]   ;;  %v3390_v9 = vld [vmem:[%s4708_s1 + $0x20] sm:$0xff]  }
   0x3   :  { %3292 = vmatpush3.bf16.msra.mxu0 %v3387_v3  ;;  %3307 = vmatprep.mubr.msk.bf16.mxu0 %vm3731_vm0, %v3730_v2  ;;  %v3395_v7 = vld [vmem:[%s4711_s4 + $0x154] ss:$24 sps:$4 sm:$0xff]   ;;  %v3397_v8 = vld [vmem:[%s4711_s4 + $0x150] ss:$24 sps:$4 sm:$0xff]   ;;  %v3401_v10 = vld [vmem:[%s4711_s4 + $0x124] ss:$24 sps:$4 sm:$0xff]  }
   0x4   :  { %3293 = vmatprep.subr.bf16.mxu0 %v3730_v2  ;;  %576 = vmatprep.subr.bf16.mxu1 %v3395_v7  ;;  %v3403_v11 = vld [vmem:[%s4711_s4 + $0x120] ss:$24 sps:$4 sm:$0xff]   ;;  %v3407_v12 = vld [vmem:[%s4711_s4 + $0xf4] ss:$24 sps:$4 sm:$0xff]   ;;  %v3409_v14 = vld [vmem:[%s4711_s4 + $0xf0] ss:$24 sps:$4 sm:$0xff]  }
   0x5   :  { %577 = vmatpush1.bf16.msra.mxu1 %v3397_v8  ;;  %v3391_v13 = vld [vmem:[%s4708_s1 + $0x18] sm:$0xff]   ;;  %v3392_v16 = vld [vmem:[%s4708_s1 + $0x10] sm:$0xff]   ;;  %v3393_v19 = vld [vmem:[%s4708_s1 + $0x8] sm:$0xff]  }
   0x6   :  { %54 = vperm.xlu0 %3386, %v47_v4   ;;  %578 = vmatprep.subr.bf16.mxu1 %v3401_v10  ;;  %v3413_v15 = vld [vmem:[%s4711_s4 + $0xc4] ss:$24 sps:$4 sm:$0xff]   ;;  %v3415_v17 = vld [vmem:[%s4711_s4 + $0xc0] ss:$24 sps:$4 sm:$0xff]   ;;  %v3419_v18 = vld [vmem:[%s4711_s4 + $0x94] ss:$24 sps:$4 sm:$0xff]  }
   0x7   :  { %3294 = vmatpush3.bf16.msra.mxu0 %v3388_v5  ;;  %v3421_v20 = vld [vmem:[%s4711_s4 + $0x90] ss:$24 sps:$4 sm:$0xff]   ;;  %v3394_v21 = vld [vmem:[%s4708_s1] sm:$0xff]   ;;  %v3400_v23 = vld [vmem:[%s4711_s4 + $0x15c] ss:$24 sps:$4 sm:$0xff]  }
   0x8   :  { %3295 = vmatprep.subr.bf16.mxu0 %v3730_v2  ;;  %v3425_v22 = vld [vmem:[%s4711_s4 + $0x64] ss:$24 sps:$4 sm:$0xff]   ;;  %v3427_v24 = vld [vmem:[%s4711_s4 + $0x60] ss:$24 sps:$4 sm:$0xff]  }
   0x9   :  { %579 = vmatpush1.bf16.msra.mxu1 %v3403_v11 }
   0xa   :  { %580 = vmatprep.subr.bf16.mxu1 %v3407_v12 }
   0xb   :  { %3296 = vmatpush3.bf16.msra.mxu0 %v3389_v6 }
   0xc   :  { %3297 = vmatprep.subr.bf16.mxu0 %v3730_v2 }
   0xd   :  { %581 = vmatpush1.bf16.msra.mxu1 %v3409_v14 }
   0xe   :  { %582 = vmatprep.subr.bf16.mxu1 %v3413_v15 }
   0xf   :  { %3298 = vmatpush3.bf16.msra.mxu0 %v3390_v9 }
  0x10   :  { %3299 = vmatprep.subr.bf16.mxu0 %v3730_v2 }
  0x11   :  { %583 = vmatpush1.bf16.msra.mxu1 %v3415_v17 }
  0x12   :  { %584 = vmatprep.subr.bf16.mxu1 %v3419_v18 }
  0x13   :  { %3300 = vmatpush3.bf16.msra.mxu0 %v3391_v13 }
  0x14   :  { %3301 = vmatprep.subr.bf16.mxu0 %v3730_v2 }
  0x15   :  { %585 = vmatpush1.bf16.msra.mxu1 %v3421_v20 }
  0x16   :  { %586 = vmatprep.subr.bf16.mxu1 %v3425_v22 }
  0x17   :  { %3302 = vmatpush3.bf16.msra.mxu0 %v3392_v16 }
  0x18   :  { %3303 = vmatprep.subr.bf16.mxu0 %v3730_v2 }
  0x19   :  { %587 = vmatpush1.bf16.msra.mxu1 %v3427_v24 }
  0x1b   :  { %3304 = vmatpush3.bf16.msra.mxu0 %v3393_v19 }
  0x1c   :  { %3305 = vmatprep.subr.bf16.mxu0 %v3730_v2 }
  0x1f   :  { %3306 = vmatpush3.bf16.msra.mxu0 %v3394_v21 }
  0x20   :  { %619 = vmatprep.subr.bf16.mxu0 %v3400_v23 }
  0x21   :  { %18 = vsyncpa [#allocation3], 0  ;;  %v48_v25 = vlaneseq  ;;  %v3398_v29 = vld [vmem:[%s4711_s4 + $0x158] ss:$24 sps:$4 sm:$0xff]   ;;  %v3406_v30 = vld [vmem:[%s4711_s4 + $0x12c] ss:$24 sps:$4 sm:$0xff]  }
  0x22   :  { %v3732_v31 = vmov 1.0|1.0   ;;  %v3404_v32 = vld [vmem:[%s4711_s4 + $0x128] ss:$24 sps:$4 sm:$0xff]   ;;  %v3412_v33 = vld [vmem:[%s4711_s4 + $0xfc] ss:$24 sps:$4 sm:$0xff]  }
  0x23   :  { %v3888_v27 = vand.u32 127, %v48_v25  ;;  %v3410_v34 = vld [vmem:[%s4711_s4 + $0xf8] ss:$24 sps:$4 sm:$0xff]   ;;  %v3418_v35 = vld [vmem:[%s4711_s4 + $0xcc] ss:$24 sps:$4 sm:$0xff]   ;;  %v4018_v12 = vshrl.u32 %v48_v25, 7 }
  0x24   :  { %v3416_v36 = vld [vmem:[%s4711_s4 + $0xc8] ss:$24 sps:$4 sm:$0xff]   ;;  %v3424_v37 = vld [vmem:[%s4711_s4 + $0x9c] ss:$24 sps:$4 sm:$0xff]   ;;  %v3422_v38 = vld [vmem:[%s4711_s4 + $0x98] ss:$24 sps:$4 sm:$0xff]  }
  0x25   :  { %v3430_v39 = vld [vmem:[%s4711_s4 + $0x6c] ss:$24 sps:$4 sm:$0xff]   ;;  %v3428_v40 = vld [vmem:[%s4711_s4 + $0x68] ss:$24 sps:$4 sm:$0xff]   ;;  %v3436_v43 = vld [vmem:[%s4711_s4 + $0x3c] ss:$24 sps:$4 sm:$0xff]  }
  0x26   :  { %v3431_v41 = vld [vmem:[%s4711_s4 + $0x34] ss:$24 sps:$4 sm:$0xff]   ;;  %v3433_v42 = vld [vmem:[%s4711_s4 + $0x30] ss:$24 sps:$4 sm:$0xff]   ;;  %v3437_v45 = vld [vmem:[%s4711_s4 + $0x4] ss:$24 sps:$4 sm:$0xff]  }
  0x27   :  { %588 = vmatprep.subr.bf16.mxu1 %v3431_v41  ;;  %v3434_v44 = vld [vmem:[%s4711_s4 + $0x38] ss:$24 sps:$4 sm:$0xff]   ;;  %v3442_v47 = vld [vmem:[%s4711_s4 + $0xc] ss:$24 sps:$4 sm:$0xff]   ;;  %v3440_v48 = vld [vmem:[%s4711_s4 + $0x8] ss:$24 sps:$4 sm:$0xff]  }
  0x28   :  { %589 = vmatpush1.bf16.msra.mxu1 %v3433_v42  ;;  %v3439_v46 = vld [vmem:[%s4711_s4] ss:$24 sps:$4 sm:$0xff]   ;;  %v3445_v49 = vld [vmem:[%s4711_s4 + $0x164] ss:$24 sps:$4 sm:$0xff]   ;;  %v78_v53 = vld [vmem:[%s4709_s2 + $0x8] sm:$0xff]  ;;  %v4021_v13 = vsub.s32 2, %v4018_v12 }
  0x29   :  { %590 = vmatprep.subr.bf16.mxu1 %v3437_v45  ;;  %v77_v51 = vld [vmem:[%s4709_s2] sm:$0xff]  ;;  %v3448_v60 = vld [vmem:[%s4711_s4 + $0x134] ss:$24 sps:$4 sm:$0xff]   ;;  %v3446_v61 = vld [vmem:[%s4711_s4 + $0x130] ss:$24 sps:$4 sm:$0xff]   ;;  %v4031_v20 = vsub.s32 0, %v4018_v12 }
  0x2a   :  { %v3443_v58 = vld [vmem:[%s4711_s4 + $0x160] ss:$24 sps:$4 sm:$0xff]   ;;  %v3451_v62 = vld [vmem:[%s4711_s4 + $0x104] ss:$24 sps:$4 sm:$0xff]   ;;  %v3454_v0 = vld [vmem:[%s4711_s4 + $0xd4] ss:$24 sps:$4 sm:$0xff]  }
  0x2b   :  { %v3449_v63 = vld [vmem:[%s4711_s4 + $0x100] ss:$24 sps:$4 sm:$0xff]   ;;  %v3452_v3 = vld [vmem:[%s4711_s4 + $0xd0] ss:$24 sps:$4 sm:$0xff]   ;;  %v3457_v4 = vld [vmem:[%s4711_s4 + $0xa4] ss:$24 sps:$4 sm:$0xff]  }
  0x2c   :  { %591 = vmatpush1.bf16.msra.mxu1 %v3439_v46  ;;  %v3455_v5 = vld [vmem:[%s4711_s4 + $0xa0] ss:$24 sps:$4 sm:$0xff]   ;;  %v3460_v6 = vld [vmem:[%s4711_s4 + $0x74] ss:$24 sps:$4 sm:$0xff]   ;;  %v3458_v7 = vld [vmem:[%s4711_s4 + $0x70] ss:$24 sps:$4 sm:$0xff]  }
  0x2d   :  { %662 = vmatprep.subr.bf16.mxu1 %v3445_v49  ;;  %v3463_v8 = vld [vmem:[%s4711_s4 + $0x44] ss:$24 sps:$4 sm:$0xff]   ;;  %v3461_v9 = vld [vmem:[%s4711_s4 + $0x40] ss:$24 sps:$4 sm:$0xff]   ;;  %v3466_v10 = vld [vmem:[%s4711_s4 + $0x14] ss:$24 sps:$4 sm:$0xff]  }
  0x2e   :  { %v3464_v11 = vld [vmem:[%s4711_s4 + $0x10] ss:$24 sps:$4 sm:$0xff]   ;;  %v4026_v14 = vld [vmem:[%s4712_s5] sm:$0x3f]  ;;  %v4034_v23 = vsub.s32 3, %v4018_v12  ;;  %vm749_vm4 = vcmask 130048  }
  0x2f   :  { %v317_v17 = vrot.slane %v4026_v14, %v4021_v13  ;;  %vm168_vm5 = vcmp.lt.s32.totalorder %v3888_v27, 32  ;;  %s3733_s0 = smov [#allocation2]  }
  0x7d   :  { %v52_v26 = vpop.permute.xlu0 %51 }
  0x7e   :  { %vm56_vm1 = vcmp.eq.s32.totalorder %v3888_v27, %v52_v26 }
  0x81   :  { %v55_v28 = vpop.permute.xlu0 %54 }
  0x82   :  { %vm57_vm2 = vcmp.eq.s32.totalorder %v3888_v27, %v55_v28  ;;  %v309_v28 = vrot.slane %v4026_v14, %v4031_v20 }
  0x83   :  { %vm2830_vm3 = vmpackc.low %vm57_vm2, %vm56_vm1 }
  0x84   :  { %3308 = vmatmul.mubr.msk.bf16.vlgmr.msra.gmra.mxu0 %vm2830_vm3, %v3732_v31 }
  0x85   :  { %620 = vmatpush1.bf16.msra.mxu0 %v3398_v29  ;;  %651 = vmatprep.mubr.bf16.mxu0 %v3729_v1 }
  0x86   :  { %621 = vmatprep.subr.bf16.mxu0 %v3406_v30  ;;  %v321_v30 = vrot.slane %v4026_v14, %v4034_v23 }
  0x89   :  { %622 = vmatpush1.bf16.msra.mxu0 %v3404_v32 }
  0x8a   :  { %623 = vmatprep.subr.bf16.mxu0 %v3412_v33 }
  0x8d   :  { %624 = vmatpush1.bf16.msra.mxu0 %v3410_v34  ;;  %v4042_v34 = vsub.s32 1, %v4018_v12 }
  0x8e   :  { %625 = vmatprep.subr.bf16.mxu0 %v3418_v35 }
  0x91   :  { %626 = vmatpush1.bf16.msra.mxu0 %v3416_v36 }
  0x92   :  { %627 = vmatprep.subr.bf16.mxu0 %v3424_v37 }
  0x95   :  { %628 = vmatpush1.bf16.msra.mxu0 %v3422_v38 }
  0x96   :  { %629 = vmatprep.subr.bf16.mxu0 %v3430_v39  ;;  %v313_v39 = vrot.slane %v4026_v14, %v4042_v34 }
  0x99   :  { %630 = vmatpush1.bf16.msra.mxu0 %v3428_v40 }
  0x9a   :  { %631 = vmatprep.subr.bf16.mxu0 %v3436_v43  ;;  %v4049_v43 = vsub.s32 4, %v4018_v12 }
  0x9c   :  { %v325_v45 = vrot.slane %v4026_v14, %v4049_v43 }
  0x9d   :  { %632 = vmatpush1.bf16.msra.mxu0 %v3434_v44 }
  0x9e   :  { %633 = vmatprep.subr.bf16.mxu0 %v3442_v47 }
  0xa1   :  { %634 = vmatpush1.bf16.msra.mxu0 %v3440_v48 }
  0xa2   :  { %3311 = vmatprep.subr.bf16.mxu0 %v3730_v2 }
 0x144   :  { %v161_v50 = vpop.f32.mrf.mxu0 }
 0x145   :  { %v3960_v55 = vadd.f32 %v161_v50, %v77_v51  ;;  %v4059_v51 = vld [vmem:[%s4710_s3] sm:$0xff] }
 0x146   :  { %v3309_v52 = vpop.f32.mrf.mxu0 }
 0x148   :  { %v164_v54 = vpop.f32.mrf.mxu0 }
 0x149   :  { %v3962_v56 = vadd.f32 %v164_v54, %v78_v53 }
 0x14a   :  { %v3310_v57 = vpop.f32.mrf.mxu0 }
 0x14b   :  { %v304_v59 = vpack.c.bf16 %v3962_v56, %v3960_v55  ;;  %v4065_v57 = vld [vmem:[%s4710_s3 + $0x8] sm:$0xff]  ;;  %s2811_s3 = sshll.u32 %s3733_s0, 4  ;;  %s2812_s3 = int_to_ptr.vmem [resolvable:$true] %s2811_s3 }
 0x14c   :  { %s3707_s18 = scalar_lea.vmem %s2812_s3, 256  ;;  %p3712_p1 = scmp.lt.s32.totalorder %s2812_s3, %s2812_s3 }
 0x14d   :  { %609 = vmatmul.mubr.bf16.vlgmr.msra.gmra.mxu1 %v304_v59  ;;  %652 = vmatmul.mubr.bf16.vlgmr.msra.gmra.mxu0 %v304_v59  ;;  %p3708_p0 = scmp.ne.s32.totalorder %s2812_s3, %s3707_s18  ;;  %p3713_p2 = scmp.lt.s32.totalorder %s3707_s18, %s3707_s18 }
 0x14e   :  { %663 = vmatpush1.bf16.msra.mxu1 %v3443_v58  ;;  %694 = vmatprep.mubr.bf16.mxu1 %v3729_v1 }
 0x14f   :  { %664 = vmatprep.subr.bf16.mxu1 %v3448_v60  ;;  %3313 = vmatprep.mubr.msk.bf16.mxu0 %vm3731_vm0, %v3730_v2  ;;  %p3714_p3 = por %p3713_p2, %p3712_p1 }
 0x151   :  { %p3715_p4 = pnand %p3714_p3, %p3708_p0 }
 0x152   :  { %665 = vmatpush1.bf16.msra.mxu1 %v3446_v61 }
 0x153   :  { %666 = vmatprep.subr.bf16.mxu1 %v3451_v62 }
 0x156   :  { %667 = vmatpush1.bf16.msra.mxu1 %v3449_v63 }
 0x157   :  { %668 = vmatprep.subr.bf16.mxu1 %v3454_v0 }
 0x15a   :  { %669 = vmatpush1.bf16.msra.mxu1 %v3452_v3 }
 0x15b   :  { %670 = vmatprep.subr.bf16.mxu1 %v3457_v4 }
 0x15e   :  { %671 = vmatpush1.bf16.msra.mxu1 %v3455_v5 }
 0x15f   :  { %672 = vmatprep.subr.bf16.mxu1 %v3460_v6 }
 0x162   :  { %673 = vmatpush1.bf16.msra.mxu1 %v3458_v7 }
 0x163   :  { %674 = vmatprep.subr.bf16.mxu1 %v3463_v8 }
 0x166   :  { %675 = vmatpush1.bf16.msra.mxu1 %v3461_v9 }
 0x167   :  { %676 = vmatprep.subr.bf16.mxu1 %v3466_v10 }
 0x16a   :  { %677 = vmatpush1.bf16.msra.mxu1 %v3464_v11 }
 0x16b   :  { %3317 = vmatprep.subr.bf16.mxu1 %v3730_v2 }
 0x16d   :  { %695 = vmatmul.mubr.bf16.vlgmr.msra.gmra.mxu1 %v304_v59 }
 0x16e   :  { %3319 = vmatprep.mubr.msk.bf16.mxu1 %vm3731_vm0, %v3730_v2 }
 0x20d   :  { %v610_v15 = vpop.f32.mrf.mxu1  ;;  %v653_v16 = vpop.f32.mrf.mxu0 }
 0x20e   :  { %v654_v22 = vadd.f32 %v653_v16, %v317_v17  ;;  %v611_v33 = vadd.f32 %v610_v15, %v309_v28 }
 0x20f   :  { %v655_v18 = vpop.f32.mrf.mxu0  ;;  %v612_v19 = vpop.f32.mrf.mxu1 }
 0x210   :  { %v656_v35 = vadd.f32 %v655_v18, %v321_v30  ;;  %v613_v41 = vadd.f32 %v612_v19, %v313_v39 }
 0x211   :  { %v657_v21 = vpop.f32.mrf.mxu0  ;;  %v614_v25 = vpop.f32.mrf.mxu1 }
 0x212   :  { %v658_v24 = vadd.f32 %v657_v21, %v317_v17  ;;  %v615_v31 = vadd.f32 %v614_v25, %v309_v28 }
 0x213   :  { %v659_v29 = vpop.f32.mrf.mxu0  ;;  %v616_v37 = vpop.f32.mrf.mxu1 }
 0x214   :  { %v706_v26 = vpack.c.bf16 %v658_v24, %v654_v22  ;;  %v660_v32 = vadd.f32 %v659_v29, %v321_v30  ;;  %v705_v36 = vpack.c.bf16 %v615_v31, %v611_v33  ;;  %v617_v40 = vadd.f32 %v616_v37, %v313_v39  ;;  %v3468_v37 = vld [vmem:[%s4713_s6 + $0x38] sm:$0xff]   ;;  %v3470_v39 = vld [vmem:[%s4713_s6 + $0x30] sm:$0xff]  }
 0x216   :  { %3312 = vmatpush3.bf16.xpose.msra.mxu0 %v706_v26  ;;  %v818_v38 = vpack.c.bf16 %v660_v32, %v656_v35  ;;  %v817_v42 = vpack.c.bf16 %v617_v40, %v613_v41  ;;  %v3471_v40 = vld [vmem:[%s4713_s6 + $0x68] sm:$0xff]  }
 0x217   :  { %3323 = vmatprep.subr.bf16.mxu0 %v3730_v2  ;;  %v3472_v41 = vld [vmem:[%s4713_s6 + $0x28] sm:$0xff]  }
 0x21d   :  { %3314 = vmatmul.mubr.bf16.vlgmr.msra.gmra.mxu0 %v705_v36  ;;  %v3467_v36 = vld [vmem:[%s4713_s6 + $0x78] sm:$0xff]  }
 0x21e   :  { %3324 = vmatpush3.bf16.xpose.msra.mxu0 %v818_v38  ;;  %3325 = vmatprep.mubr.msk.bf16.mxu0 %vm3731_vm0, %v3730_v2  ;;  %v3469_v38 = vld [vmem:[%s4713_s6 + $0x70] sm:$0xff]  }
 0x21f   :  { %3186 = vmatprep.subr.bf16.mxu0 %v3467_v36 }
 0x225   :  { %3326 = vmatmul.mubr.bf16.vlgmr.msra.gmra.mxu0 %v817_v42  ;;  %v3473_v42 = vld [vmem:[%s4713_s6 + $0x60] sm:$0xff]  }
 0x226   :  { %3187 = vmatpush3.bf16.msra.mxu0 %v3468_v37 }
 0x227   :  { %3188 = vmatprep.subr.bf16.mxu0 %v3469_v38 }
 0x22a   :  { %3189 = vmatpush3.bf16.msra.mxu0 %v3470_v39 }
 0x22b   :  { %3190 = vmatprep.subr.bf16.mxu0 %v3471_v40 }
 0x22d   :  { %v696_v44 = vpop.f32.mrf.mxu1 }
 0x22e   :  { %v697_v48 = vadd.f32 %v696_v44, %v325_v45  ;;  %3191 = vmatpush3.bf16.msra.mxu0 %v3472_v41  ;;  %v3474_v44 = vld [vmem:[%s4713_s6 + $0x20] sm:$0xff]  }
 0x22f   :  { %v4053_v46 = vpop.f32.mrf.mxu1  ;;  %3192 = vmatprep.subr.bf16.mxu0 %v3473_v42  ;;  %v3483_v42 = vld [vmem:[%s4714_s7 + $0x70] ss:$8 sps:$4 sm:$0xff]  }
 0x231   :  { %v700_v47 = vpop.f32.mrf.mxu1 }
 0x232   :  { %v701_v49 = vadd.f32 %v700_v47, %v325_v45  ;;  %3193 = vmatpush3.bf16.msra.mxu0 %v3474_v44  ;;  %v3485_v44 = vld [vmem:[%s4714_s7 + $0x74] ss:$8 sps:$4 sm:$0xff]  }
 0x234   :  { %v707_v50 = vpack.c.bf16 %v701_v49, %v697_v48  ;;  %v4103_v49 = vsub.s32 5, %v4018_v12 }
 0x236   :  { %3318 = vmatpush3.bf16.msra.mxu1 %v707_v50 }
 0x237   :  { %3329 = vmatprep.subr.bf16.mxu1 %v3730_v2 }
 0x2dd   :  { %v742_v52 = vpop.f32.mrf.mxu0 }
 0x2de   :  { %v743_v53 = vadd.f32 %v742_v52, %v4059_v51  ;;  %v702_v52 = vpop.f32.mrf.mxu1 }
 0x2df   :  { %v3315_v54 = vpop.f32.mrf.mxu0 }
 0x2e0   :  { %v750_v58 = vsel %vm749_vm4, %v743_v53, -inf  ;;  %v329_v54 = vrot.slane %v4026_v14, %v4103_v49  ;;  %v3475_v14 = vld [vmem:[%s4713_s6 + $0x58] sm:$0xff]  }
 0x2e1   :  { %751 = vmax.xlane.f32.xlu1 %v750_v58  ;;  %v745_v59 = vpop.f32.mrf.mxu0  ;;  %3194 = vmatprep.subr.bf16.mxu0 %v3475_v14  ;;  %v3501_v14 = vld [vmem:[%s4714_s7 + $0x10] ss:$8 sps:$4 sm:$0xff]  }
 0x2e2   :  { %v746_v60 = vadd.f32 %v745_v59, %v4065_v57  ;;  %v703_v59 = vadd.f32 %v702_v52, %v329_v54 }
 0x2e3   :  { %v3316_v61 = vpop.f32.mrf.mxu0 }
 0x2e4   :  { %v753_v62 = vsel %vm749_vm4, %v746_v60, -inf }
 0x2e5   :  { %754 = vmax.xlane.f32.xlu1 %v753_v62  ;;  %v854_v63 = vpop.f32.mrf.mxu0  ;;  %v699_v62 = vadd.f32 %v4053_v46, %v329_v54  ;;  %v3476_v46 = vld [vmem:[%s4713_s6 + $0x18] sm:$0xff]  }
 0x2e6   :  { %v855_v0 = vadd.f32 %v854_v63, %v4059_v51  ;;  %3195 = vmatpush3.bf16.msra.mxu0 %v3476_v46  ;;  %v3506_v46 = vld [vmem:[%s4714_s7 + $0x4] ss:$8 sps:$4 sm:$0xff]  }
 0x2e7   :  { %v3327_v3 = vpop.f32.mrf.mxu0 }
 0x2e8   :  { %v861_v4 = vsel %vm749_vm4, %v855_v0, -inf }
 0x2e9   :  { %862 = vmax.xlane.f32.xlu0 %v861_v4  ;;  %v857_v5 = vpop.f32.mrf.mxu0 }
 0x2ea   :  { %v858_v6 = vadd.f32 %v857_v5, %v4065_v57 }
 0x2eb   :  { %v3328_v7 = vpop.f32.mrf.mxu0 }
 0x2ec   :  { %v864_v8 = vsel %vm749_vm4, %v858_v6, -inf  ;;  %v3477_v7 = vld [vmem:[%s4713_s6 + $0x50] sm:$0xff]  }
 0x2ed   :  { %865 = vmax.xlane.f32.xlu1 %v864_v8  ;;  %v3478_v8 = vld [vmem:[%s4713_s6 + $0x10] sm:$0xff]   ;;  %3196 = vmatprep.subr.bf16.mxu0 %v3477_v7  ;;  %v3504_v7 = vld [vmem:[%s4714_s7] ss:$8 sps:$4 sm:$0xff]  }
 0x2ee   :  { %3197 = vmatpush3.bf16.msra.mxu0 %v3478_v8  ;;  %v3507_v8 = vld [vmem:[%s4716_s9 + $0x78] sm:$0xff]  }
 0x36a   :  { %v752_v9 = vpop.xlane.xlu1 %751 }
 0x36b   :  { %v756_v10 = vsub.f32 %v743_v53, %v752_v9  ;;  %v3479_v9 = vld [vmem:[%s4713_s6 + $0x48] sm:$0xff]  }
 0x36c   :  { %3198 = vmatprep.subr.bf16.mxu0 %v3479_v9  ;;  %v3508_v9 = vld [vmem:[%s4716_s9 + $0x38] sm:$0xff]  }
 0x36d   :  { %v758_v11 = vmul.f32 1.442695, %v756_v10  ;;  %v3480_v10 = vld [vmem:[%s4713_s6 + $0x8] sm:$0xff]  }
 0x36e   :  { %v755_v15 = vpop.xlane.xlu1 %754  ;;  %3199 = vmatpush3.bf16.msra.mxu0 %v3480_v10  ;;  %v3509_v10 = vld [vmem:[%s4716_s9 + $0x70] sm:$0xff]  }
 0x36f   :  { %3659 = vpow2.f32 %v758_v11  ;;  %v757_v16 = vsub.f32 %v746_v60, %v755_v15  ;;  %v3481_v11 = vld [vmem:[%s4713_s6 + $0x40] sm:$0xff]  }
 0x370   :  { %v3482_v15 = vld [vmem:[%s4713_s6] sm:$0xff]   ;;  %3200 = vmatprep.subr.bf16.mxu0 %v3481_v11  ;;  %v3510_v11 = vld [vmem:[%s4716_s9 + $0x30] sm:$0xff]  }
 0x371   :  { %v760_v17 = vmul.f32 1.442695, %v757_v16 }
 0x372   :  { %v863_v18 = vpop.xlane.xlu0 %862  ;;  %3201 = vmatpush3.bf16.msra.mxu0 %v3482_v15  ;;  %v3511_v15 = vld [vmem:[%s4716_s9 + $0x68] sm:$0xff]  }
 0x373   :  { %3661 = vpow2.f32 %v760_v17  ;;  %v867_v19 = vsub.f32 %v855_v0, %v863_v18  ;;  %v819_v0 = vpack.c.bf16 %v703_v59, %v699_v62  ;;  %v3488_v59 = vld [vmem:[%s4714_s7 + $0x64] ss:$8 sps:$4 sm:$0xff]   ;;  %v3489_v62 = vld [vmem:[%s4714_s7 + $0x50] ss:$8 sps:$4 sm:$0xff]   ;;  %3208 = vmatprep.subr.bf16.mxu0 %v3507_v8 }
 0x375   :  { %v869_v21 = vmul.f32 1.442695, %v867_v19 }
 0x376   :  { %v866_v22 = vpop.xlane.xlu1 %865 }
 0x377   :  { %3663 = vpow2.f32 %v869_v21  ;;  %v868_v24 = vsub.f32 %v858_v6, %v866_v22 }
 0x379   :  { %v871_v25 = vmul.f32 1.442695, %v868_v24 }
 0x37b   :  { %3665 = vpow2.f32 %v871_v25 }
 0x37c   :  { %v3660_v26 = vpop.eup %3659 }
 0x37d   :  { %v762_v28 = vsel %vm749_vm4, %v3660_v26, 0.0 }
 0x37e   :  { %763 = vadd.xlane.f32.xlu1 %v762_v28 }
 0x380   :  { %v3662_v29 = vpop.eup %3661 }
 0x381   :  { %v765_v30 = vsel %vm749_vm4, %v3662_v29, 0.0 }
 0x382   :  { %766 = vadd.xlane.f32.xlu1 %v765_v30 }
 0x384   :  { %v3664_v31 = vpop.eup %3663 }
 0x385   :  { %v873_v32 = vsel %vm749_vm4, %v3664_v31, 0.0 }
 0x386   :  { %874 = vadd.xlane.f32.xlu1 %v873_v32 }
 0x388   :  { %v3666_v33 = vpop.eup %3665 }
 0x389   :  { %v876_v35 = vsel %vm749_vm4, %v3666_v33, 0.0 }
 0x38a   :  { %877 = vadd.xlane.f32.xlu1 %v876_v35 }
 0x407   :  { %v764_v45 = vpop.xlane.xlu1 %763 }
 0x408   :  { %3667 = vrcp.f32 %v764_v45 }
 0x40b   :  { %v767_v47 = vpop.xlane.xlu1 %766 }
 0x40c   :  { %3669 = vrcp.f32 %v767_v47 }
 0x40f   :  { %v875_v48 = vpop.xlane.xlu1 %874 }
 0x410   :  { %3671 = vrcp.f32 %v875_v48 }
 0x413   :  { %v878_v50 = vpop.xlane.xlu1 %877 }
 0x414   :  { %3673 = vrcp.f32 %v878_v50 }
 0x415   :  { %v3668_v53 = vpop.eup %3667 }
 0x416   :  { %v770_v60 = vmul.f32 %v3668_v53, %v3660_v26 }
 0x419   :  { %v3670_v58 = vpop.eup %3669 }
 0x41a   :  { %v771_v61 = vmul.f32 %v3670_v58, %v3662_v29  ;;  %v4140_v29 = vld [vmem:[%s4717_s10] sm:$0xff] }
 0x41c   :  { %v772_v63 = vpack.c.bf16 %v771_v61, %v770_v60  ;;  %v3486_v60 = vld [vmem:[%s4714_s7 + $0x60] ss:$8 sps:$4 sm:$0xff]   ;;  %v3491_v61 = vld [vmem:[%s4714_s7 + $0x54] ss:$8 sps:$4 sm:$0xff]  }
 0x41d   :  { %v3672_v3 = vpop.eup %3671 }
 0x41e   :  { %3320 = vmatmul.mubr.msk.bf16.vlgmr.msra.gmra.mxu1 %vm749_vm4, %v772_v63  ;;  %v881_v4 = vmul.f32 %v3672_v3, %v3664_v31  ;;  %v933_v31 = vrot.slane %v4140_v29, %v4031_v20  ;;  %v3492_v63 = vld [vmem:[%s4714_s7 + $0x40] ss:$8 sps:$4 sm:$0xff]   ;;  %v3497_v3 = vld [vmem:[%s4714_s7 + $0x34] ss:$8 sps:$4 sm:$0xff]  }
 0x41f   :  { %3330 = vmatpush3.bf16.msra.mxu1 %v819_v0  ;;  %3331 = vmatprep.mubr.msk.bf16.mxu1 %vm3731_vm0, %v3730_v2  ;;  %v3494_v0 = vld [vmem:[%s4714_s7 + $0x44] ss:$8 sps:$4 sm:$0xff]  }
 0x420   :  { %1201 = vmatprep.subr.bf16.mxu1 %v3485_v44  ;;  %v3517_v44 = vld [vmem:[%s4716_s9 + $0x50] sm:$0xff]  }
 0x421   :  { %v3674_v12 = vpop.eup %3673 }
 0x422   :  { %v882_v5 = vmul.f32 %v3674_v12, %v3666_v33  ;;  %v3495_v12 = vld [vmem:[%s4714_s7 + $0x30] ss:$8 sps:$4 sm:$0xff]  }
 0x424   :  { %v883_v6 = vpack.c.bf16 %v882_v5, %v881_v4  ;;  %v3500_v4 = vld [vmem:[%s4714_s7 + $0x24] ss:$8 sps:$4 sm:$0xff]   ;;  %v3498_v5 = vld [vmem:[%s4714_s7 + $0x20] ss:$8 sps:$4 sm:$0xff]  }
 0x426   :  { %3332 = vmatmul.mubr.msk.bf16.vlgmr.msra.gmra.mxu1 %vm749_vm4, %v883_v6  ;;  %v3503_v6 = vld [vmem:[%s4714_s7 + $0x14] ss:$8 sps:$4 sm:$0xff]  }
 0x427   :  { %1233 = vmatprep.mubr.bf16.mxu1 %v3729_v1  ;;  %1202 = vmatpush1.bf16.msra.mxu1 %v3483_v42 }
 0x428   :  { %1203 = vmatprep.subr.bf16.mxu1 %v3488_v59 }
 0x42b   :  { %1204 = vmatpush1.bf16.msra.mxu1 %v3486_v60 }
 0x42c   :  { %1205 = vmatprep.subr.bf16.mxu1 %v3491_v61 }
 0x42f   :  { %1206 = vmatpush1.bf16.msra.mxu1 %v3489_v62 }
 0x430   :  { %1207 = vmatprep.subr.bf16.mxu1 %v3494_v0 }
 0x433   :  { %1208 = vmatpush1.bf16.msra.mxu1 %v3492_v63 }
 0x434   :  { %1209 = vmatprep.subr.bf16.mxu1 %v3497_v3 }
 0x437   :  { %1210 = vmatpush1.bf16.msra.mxu1 %v3495_v12 }
 0x438   :  { %1211 = vmatprep.subr.bf16.mxu1 %v3500_v4 }
 0x43b   :  { %1212 = vmatpush1.bf16.msra.mxu1 %v3498_v5 }
 0x43c   :  { %1213 = vmatprep.subr.bf16.mxu1 %v3503_v6 }
 0x43f   :  { %1214 = vmatpush1.bf16.msra.mxu1 %v3501_v14 }
 0x440   :  { %1215 = vmatprep.subr.bf16.mxu1 %v3506_v46 }
 0x443   :  { %1216 = vmatpush1.bf16.msra.mxu1 %v3504_v7  ;;  %v1253_v7 = vrot.slane %v4140_v29, %v4034_v23 }
 0x4de   :  { %v810_v16 = vpop.f32.mrf.mxu1 }
 0x4e0   :  { %v3321_v17 = vpop.f32.mrf.mxu1 }
 0x4e1   :  { %v3513_v17 = vld [vmem:[%s4716_s9 + $0x60] sm:$0xff]  }
 0x4e2   :  { %v813_v18 = vpop.f32.mrf.mxu1 }
 0x4e3   :  { %v928_v26 = vpack.c.bf16 %v813_v18, %v810_v16  ;;  %v3512_v16 = vld [vmem:[%s4716_s9 + $0x28] sm:$0xff]   ;;  %v3514_v18 = vld [vmem:[%s4716_s9 + $0x20] sm:$0xff]  }
 0x4e4   :  { %v3322_v19 = vpop.f32.mrf.mxu1 }
 0x4e5   :  { %v3515_v19 = vld [vmem:[%s4716_s9 + $0x58] sm:$0xff]  }
 0x4e6   :  { %v921_v21 = vpop.f32.mrf.mxu1 }
 0x4e8   :  { %v3333_v22 = vpop.f32.mrf.mxu1 }
 0x4ea   :  { %v924_v24 = vpop.f32.mrf.mxu1 }
 0x4eb   :  { %v929_v25 = vpack.c.bf16 %v924_v24, %v921_v21  ;;  %v3516_v21 = vld [vmem:[%s4716_s9 + $0x18] sm:$0xff]  }
 0x4ec   :  { %v3334_v28 = vpop.f32.mrf.mxu1 }
 0x4ed   :  { %1062 = vmatprep.mubr.bf16.mxu0 %v929_v25 }
 0x4ee   :  { %1063 = vmatmul.mubr.bf16.vlgmr.msra.gmra.mxu0 %v928_v26 }
 0x4ef   :  { %3209 = vmatpush3.bf16.msra.mxu0 %v3508_v9 }
 0x4f0   :  { %3210 = vmatprep.subr.bf16.mxu0 %v3509_v10 }
 0x4f3   :  { %3211 = vmatpush3.bf16.msra.mxu0 %v3510_v11 }
 0x4f4   :  { %3212 = vmatprep.subr.bf16.mxu0 %v3511_v15 }
 0x4f7   :  { %3213 = vmatpush3.bf16.msra.mxu0 %v3512_v16 }
 0x4f8   :  { %3214 = vmatprep.subr.bf16.mxu0 %v3513_v17 }
 0x4fb   :  { %3215 = vmatpush3.bf16.msra.mxu0 %v3514_v18 }
 0x4fc   :  { %3216 = vmatprep.subr.bf16.mxu0 %v3515_v19 }
 0x4ff   :  { %3217 = vmatpush3.bf16.msra.mxu0 %v3516_v21  ;;  %v3523_v21 = vld [vmem:[%s4711_s4 + $0x2d0] ss:$24 sps:$4 sm:$0xff]  }
 0x500   :  { %3218 = vmatprep.subr.bf16.mxu0 %v3517_v44  ;;  %v3537_v44 = vld [vmem:[%s4711_s4 + $0x274] ss:$24 sps:$4 sm:$0xff]  }
 0x5ae   :  { %v3202_v30 = vpop.f32.mrf.mxu0 }
 0x5b0   :  { %v3203_v32 = vpop.f32.mrf.mxu0 }
 0x5b1   :  { %v3204_v33 = vadd.f32 %v3203_v32, %v3202_v30 }
 0x5b2   :  { %v3205_v35 = vpop.f32.mrf.mxu0 }
 0x5b3   :  { %v1065_v36 = vadd.f32 %v3204_v33, %v933_v31  ;;  %v1100_v33 = vrot.slane %v4140_v29, %v4042_v34 }
 0x5b4   :  { %v3206_v37 = vpop.f32.mrf.mxu0 }
 0x5b5   :  { %v3207_v38 = vadd.f32 %v3206_v37, %v3205_v35  ;;  %v1071_v39 = vadd.f32 %v1065_v36, %v3960_v55  ;;  %v4154_v55 = vsel %vm168_vm5, 1.0, %v3730_v2 }
 0x5b7   :  { %v1068_v40 = vadd.f32 %v3207_v38, %v933_v31  ;;  %1073 = vadd.xlane.f32.xlu1 %v1071_v39  ;;  %v1106_v38 = vrot.slane %v4140_v29, %v4021_v13 }
 0x5b9   :  { %v1072_v41 = vadd.f32 %v1068_v40, %v3962_v56 }
 0x5bb   :  { %1075 = vadd.xlane.f32.xlu1 %v1072_v41 }
 0x640   :  { %v1074_v45 = vpop.xlane.xlu1 %1073 }
 0x641   :  { %v1077_v47 = vmul.f32 0.03125, %v1074_v45  ;;  %v3518_v45 = vld [vmem:[%s4716_s9 + $0x10] sm:$0xff]  }
 0x642   :  { %3219 = vmatpush3.bf16.msra.mxu0 %v3518_v45  ;;  %v3535_v45 = vld [vmem:[%s4711_s4 + $0x270] ss:$24 sps:$4 sm:$0xff]  }
 0x643   :  { %v1079_v48 = vsub.f32 %v1071_v39, %v1077_v47  ;;  %v3519_v47 = vld [vmem:[%s4716_s9 + $0x48] sm:$0xff]  }
 0x644   :  { %v1076_v56 = vpop.xlane.xlu1 %1075  ;;  %3220 = vmatprep.subr.bf16.mxu0 %v3519_v47  ;;  %v3540_v47 = vld [vmem:[%s4711_s4 + $0x27c] ss:$24 sps:$4 sm:$0xff]  }
 0x645   :  { %v1078_v50 = vmul.f32 0.03125, %v1076_v56  ;;  %v4157_v52 = vmul.f32 %v4154_v55, %v1079_v48  ;;  %v3520_v48 = vld [vmem:[%s4716_s9 + $0x8] sm:$0xff]   ;;  %v3521_v56 = vld [vmem:[%s4716_s9 + $0x40] sm:$0xff]  }
 0x646   :  { %3221 = vmatpush3.bf16.msra.mxu0 %v3520_v48  ;;  %v3538_v48 = vld [vmem:[%s4711_s4 + $0x278] ss:$24 sps:$4 sm:$0xff]  }
 0x647   :  { %v1080_v53 = vsub.f32 %v1072_v41, %v1078_v50  ;;  %v1083_v54 = vmul.f32 %v4157_v52, %v4157_v52  ;;  %v3522_v50 = vld [vmem:[%s4716_s9] sm:$0xff]   ;;  %3222 = vmatprep.subr.bf16.mxu0 %v3521_v56 }
 0x648   :  { %v3541_v56 = vld [vmem:[%s4711_s4 + $0x240] ss:$24 sps:$4 sm:$0xff]  }
 0x649   :  { %1085 = vadd.xlane.f32.xlu1 %v1083_v54  ;;  %v4162_v58 = vmul.f32 %v4154_v55, %v1080_v53 }
 0x64a   :  { %3223 = vmatpush3.bf16.msra.mxu0 %v3522_v50  ;;  %v3543_v50 = vld [vmem:[%s4711_s4 + $0x244] ss:$24 sps:$4 sm:$0xff]  }
 0x64b   :  { %v1084_v27 = vmul.f32 %v4162_v58, %v4162_v58 }
 0x64d   :  { %1087 = vadd.xlane.f32.xlu0 %v1084_v27 }
 0x6d2   :  { %v1086_v22 = vpop.xlane.xlu1 %1085 }
 0x6d3   :  { %v1089_v24 = vmul.f32 0.03125, %v1086_v22  ;;  %v3525_v22 = vld [vmem:[%s4711_s4 + $0x2d4] ss:$24 sps:$4 sm:$0xff]  }
 0x6d4   :  { %1839 = vmatprep.subr.bf16.mxu1 %v3525_v22 }
 0x6d5   :  { %v1091_v25 = vadd.f32 1e-05, %v1089_v24  ;;  %v3526_v24 = vld [vmem:[%s4711_s4 + $0x2d8] ss:$24 sps:$4 sm:$0xff]  }
 0x6d6   :  { %v1088_v26 = vpop.xlane.xlu0 %1087 }
 0x6d7   :  { %3675 = vrsqrt.f32 %v1091_v25  ;;  %v1090_v28 = vmul.f32 0.03125, %v1088_v26  ;;  %v3528_v25 = vld [vmem:[%s4711_s4 + $0x2dc] ss:$24 sps:$4 sm:$0xff]  }
 0x6d8   :  { %1882 = vmatprep.subr.bf16.mxu0 %v3528_v25  ;;  %v1426_v25 = vrot.slane %v4140_v29, %v4103_v49 }
 0x6d9   :  { %v1092_v30 = vadd.f32 1e-05, %v1090_v28 }
 0x6db   :  { %3677 = vrsqrt.f32 %v1092_v30 }
 0x6e4   :  { %v3676_v31 = vpop.eup %3675 }
 0x6e5   :  { %v1095_v32 = vmul.f32 %v3676_v31, %v4157_v52  ;;  %v270_v52 = vld [vmem:[%s4715_s8] sm:$0x3] }
 0x6e6   :  { %v1118_v54 = vrot.slane %v270_v52, %v4042_v34 }
 0x6e7   :  { %v1101_v37 = vmul.f32 %v1100_v33, %v1095_v32 }
 0x6e8   :  { %v3678_v35 = vpop.eup %3677 }
 0x6e9   :  { %v1096_v36 = vmul.f32 %v3678_v35, %v4162_v58  ;;  %v1107_v40 = vadd.f32 %v1106_v38, %v1101_v37  ;;  %v1114_v58 = vrot.slane %v270_v52, %v4031_v20  ;;  %v3544_v52 = vld [vmem:[%s4711_s4 + $0x248] ss:$24 sps:$4 sm:$0xff]  }
 0x6eb   :  { %v1102_v39 = vmul.f32 %v1100_v33, %v1096_v36 }
 0x6ed   :  { %v1108_v41 = vadd.f32 %v1106_v38, %v1102_v39  ;;  %v3531_v39 = vld [vmem:[%s4711_s4 + $0x2a4] ss:$24 sps:$4 sm:$0xff]  }
 0x6ef   :  { %v1109_v42 = vpack.c.bf16 %v1108_v41, %v1107_v40 }
 0x6f1   :  { %1234 = vmatmul.mubr.bf16.vlgmr.msra.gmra.mxu1 %v1109_v42  ;;  %v3532_v42 = vld [vmem:[%s4711_s4 + $0x2a8] ss:$24 sps:$4 sm:$0xff]  }
 0x6f2   :  { %1871 = vmatprep.mubr.bf16.mxu1 %v3729_v1  ;;  %1840 = vmatpush1.bf16.msra.mxu1 %v3523_v21 }
 0x6f3   :  { %1841 = vmatprep.subr.bf16.mxu1 %v3531_v39  ;;  %v3585_v39 = vld [vmem:[%s4711_s4 + $0x224] ss:$24 sps:$4 sm:$0xff]  }
 0x7b1   :  { %v1235_v53 = vpop.f32.mrf.mxu1 }
 0x7b2   :  { %v1236_v62 = vadd.f32 %v1235_v53, %v1114_v58  ;;  %v3546_v53 = vld [vmem:[%s4711_s4 + $0x24c] ss:$24 sps:$4 sm:$0xff]  }
 0x7b3   :  { %v1237_v27 = vpop.f32.mrf.mxu1 }
 0x7b4   :  { %v1238_v60 = vadd.f32 %v1237_v27, %v1118_v54  ;;  %v1244_v5 = vmax.f32 %v1236_v62, 0.0  ;;  %v3547_v27 = vld [vmem:[%s4711_s4 + $0x210] ss:$24 sps:$4 sm:$0xff]   ;;  %v3553_v62 = vld [vmem:[%s4711_s4 + $0x1e0] ss:$24 sps:$4 sm:$0xff]  }
 0x7b5   :  { %v1239_v59 = vpop.f32.mrf.mxu1 }
 0x7b6   :  { %v1240_v61 = vadd.f32 %v1239_v59, %v1114_v58  ;;  %v1245_v12 = vmax.f32 %v1238_v60, 0.0  ;;  %v3552_v58 = vld [vmem:[%s4711_s4 + $0x21c] ss:$24 sps:$4 sm:$0xff]   ;;  %v3550_v59 = vld [vmem:[%s4711_s4 + $0x218] ss:$24 sps:$4 sm:$0xff]  }
 0x7b7   :  { %v1241_v63 = vpop.f32.mrf.mxu1  ;;  %v3555_v60 = vld [vmem:[%s4711_s4 + $0x1e4] ss:$24 sps:$4 sm:$0xff]  }
 0x7b8   :  { %v1242_v0 = vadd.f32 %v1241_v63, %v1118_v54  ;;  %v1246_v3 = vmax.f32 %v1240_v61, 0.0  ;;  %v3549_v54 = vld [vmem:[%s4711_s4 + $0x214] ss:$24 sps:$4 sm:$0xff]   ;;  %v3556_v63 = vld [vmem:[%s4711_s4 + $0x1e8] ss:$24 sps:$4 sm:$0xff]  }
 0x7b9   :  { %v3558_v61 = vld [vmem:[%s4711_s4 + $0x1ec] ss:$24 sps:$4 sm:$0xff]  }
 0x7ba   :  { %v1247_v4 = vmax.f32 %v1242_v0, 0.0  ;;  %v1248_v14 = vpack.c.bf16 %v1246_v3, %v1244_v5  ;;  %v3561_v0 = vld [vmem:[%s4711_s4 + $0x1b4] ss:$24 sps:$4 sm:$0xff]   ;;  %v3567_v5 = vld [vmem:[%s4711_s4 + $0x184] ss:$24 sps:$4 sm:$0xff]  }
 0x7bb   :  { %v3564_v3 = vld [vmem:[%s4711_s4 + $0x1bc] ss:$24 sps:$4 sm:$0xff]  }
 0x7bc   :  { %v1249_v6 = vpack.c.bf16 %v1247_v4, %v1245_v12  ;;  %v3559_v12 = vld [vmem:[%s4711_s4 + $0x1b0] ss:$24 sps:$4 sm:$0xff]  }
 0x7bd   :  { %v3562_v4 = vld [vmem:[%s4711_s4 + $0x1b8] ss:$24 sps:$4 sm:$0xff]  }
 0x7be   :  { %1382 = vmatprep.mubr.bf16.mxu0 %v1249_v6  ;;  %v3570_v6 = vld [vmem:[%s4711_s4 + $0x18c] ss:$24 sps:$4 sm:$0xff]  }
 0x7bf   :  { %1383 = vmatmul.mubr.bf16.vlgmr.msra.gmra.mxu0 %v1248_v14  ;;  %v3565_v14 = vld [vmem:[%s4711_s4 + $0x180] ss:$24 sps:$4 sm:$0xff]  }
 0x7c0   :  { %1914 = vmatprep.mubr.bf16.mxu0 %v3729_v1  ;;  %1883 = vmatpush1.bf16.msra.mxu0 %v3526_v24 }
 0x87f   :  { %v3224_v46 = vpop.f32.mrf.mxu0 }
 0x881   :  { %v3225_v8 = vpop.f32.mrf.mxu0 }
 0x882   :  { %v3226_v9 = vadd.f32 %v3225_v8, %v3224_v46  ;;  %v3568_v46 = vld [vmem:[%s4711_s4 + $0x188] ss:$24 sps:$4 sm:$0xff]  }
 0x883   :  { %v3227_v10 = vpop.f32.mrf.mxu0 }
 0x884   :  { %v1385_v11 = vadd.f32 %v3226_v9, %v1253_v7 }
 0x885   :  { %v3228_v15 = vpop.f32.mrf.mxu0 }
 0x886   :  { %v3229_v16 = vadd.f32 %v3228_v15, %v3227_v10  ;;  %v1391_v17 = vadd.f32 %v1385_v11, %v1107_v40  ;;  %v3529_v40 = vld [vmem:[%s4711_s4 + $0x2a0] ss:$24 sps:$4 sm:$0xff]  }
 0x887   :  { %1842 = vmatpush1.bf16.msra.mxu1 %v3529_v40  ;;  %v3583_v40 = vld [vmem:[%s4711_s4 + $0x220] ss:$24 sps:$4 sm:$0xff]  }
 0x888   :  { %v1388_v18 = vadd.f32 %v3229_v16, %v1253_v7  ;;  %1393 = vadd.xlane.f32.xlu1 %v1391_v17  ;;  %1843 = vmatprep.subr.bf16.mxu1 %v3537_v44  ;;  %v3573_v7 = vld [vmem:[%s4711_s4 + $0x2e4] ss:$24 sps:$4 sm:$0xff]  }
 0x889   :  { %v3591_v44 = vld [vmem:[%s4711_s4 + $0x1c4] ss:$24 sps:$4 sm:$0xff]  }
 0x88a   :  { %v1392_v19 = vadd.f32 %v1388_v18, %v1108_v41  ;;  %v3534_v41 = vld [vmem:[%s4711_s4 + $0x2ac] ss:$24 sps:$4 sm:$0xff]  }
 0x88b   :  { %1884 = vmatprep.subr.bf16.mxu0 %v3534_v41  ;;  %1844 = vmatpush1.bf16.msra.mxu1 %v3535_v45  ;;  %v3588_v41 = vld [vmem:[%s4711_s4 + $0x1f4] ss:$24 sps:$4 sm:$0xff]   ;;  %v3589_v45 = vld [vmem:[%s4711_s4 + $0x1c0] ss:$24 sps:$4 sm:$0xff]  }
 0x88c   :  { %1395 = vadd.xlane.f32.xlu0 %v1392_v19  ;;  %1885 = vmatpush1.bf16.msra.mxu0 %v3532_v42  ;;  %v3586_v42 = vld [vmem:[%s4711_s4 + $0x1f0] ss:$24 sps:$4 sm:$0xff]  }
 0x88d   :  { %1886 = vmatprep.subr.bf16.mxu0 %v3540_v47  ;;  %1845 = vmatprep.subr.bf16.mxu1 %v3543_v50  ;;  %v3594_v47 = vld [vmem:[%s4711_s4 + $0x194] ss:$24 sps:$4 sm:$0xff]  }
 0x88f   :  { %1846 = vmatpush1.bf16.msra.mxu1 %v3541_v56  ;;  %v4447_v56 = vld [vmem:[%s4712_s5 + $0x6] sm:$0x3f] }
 0x890   :  { %1887 = vmatpush1.bf16.msra.mxu0 %v3538_v48  ;;  %1847 = vmatprep.subr.bf16.mxu1 %v3549_v54  ;;  %v3592_v48 = vld [vmem:[%s4711_s4 + $0x190] ss:$24 sps:$4 sm:$0xff]  }
 0x891   :  { %1888 = vmatprep.subr.bf16.mxu0 %v3546_v53  ;;  %v1580_v53 = vrot.slane %v4447_v56, %v4021_v13 }
 0x893   :  { %1848 = vmatpush1.bf16.msra.mxu1 %v3547_v27 }
 0x894   :  { %1889 = vmatpush1.bf16.msra.mxu0 %v3544_v52  ;;  %1849 = vmatprep.subr.bf16.mxu1 %v3555_v60 }
 0x895   :  { %1890 = vmatprep.subr.bf16.mxu0 %v3552_v58 }
 0x897   :  { %1850 = vmatpush1.bf16.msra.mxu1 %v3553_v62 }
 0x898   :  { %1891 = vmatpush1.bf16.msra.mxu0 %v3550_v59  ;;  %1851 = vmatprep.subr.bf16.mxu1 %v3561_v0 }
 0x899   :  { %1892 = vmatprep.subr.bf16.mxu0 %v3558_v61 }
 0x89b   :  { %1852 = vmatpush1.bf16.msra.mxu1 %v3559_v12 }
 0x89c   :  { %1893 = vmatpush1.bf16.msra.mxu0 %v3556_v63  ;;  %1853 = vmatprep.subr.bf16.mxu1 %v3567_v5  ;;  %v1572_v63 = vrot.slane %v4447_v56, %v4031_v20 }
 0x89d   :  { %1894 = vmatprep.subr.bf16.mxu0 %v3564_v3  ;;  %v1584_v3 = vrot.slane %v4447_v56, %v4034_v23 }
 0x89f   :  { %1854 = vmatpush1.bf16.msra.mxu1 %v3565_v14 }
 0x8a0   :  { %1895 = vmatpush1.bf16.msra.mxu0 %v3562_v4  ;;  %1925 = vmatprep.subr.bf16.mxu1 %v3573_v7 }
 0x8a1   :  { %1896 = vmatprep.subr.bf16.mxu0 %v3570_v6 }
 0x8a4   :  { %1897 = vmatpush1.bf16.msra.mxu0 %v3568_v46 }
 0x8a5   :  { %3335 = vmatprep.subr.bf16.mxu0 %v3730_v2 }
 0x911   :  { %v1394_v26 = vpop.xlane.xlu1 %1393 }
 0x912   :  { %v1397_v28 = vmul.f32 0.03125, %v1394_v26 }
 0x914   :  { %v1399_v30 = vsub.f32 %v1391_v17, %v1397_v28 }
 0x915   :  { %v1396_v31 = vpop.xlane.xlu0 %1395 }
 0x916   :  { %v1398_v32 = vmul.f32 0.03125, %v1396_v31  ;;  %v4284_v33 = vmul.f32 %v4154_v55, %v1399_v30  ;;  %v3571_v31 = vld [vmem:[%s4711_s4 + $0x2e0] ss:$24 sps:$4 sm:$0xff]  }
 0x918   :  { %v1400_v35 = vsub.f32 %v1392_v19, %v1398_v32  ;;  %v1403_v36 = vmul.f32 %v4284_v33, %v4284_v33  ;;  %v1420_v19 = vrot.slane %v4140_v29, %v4049_v43  ;;  %v3574_v29 = vld [vmem:[%s4711_s4 + $0x2b0] ss:$24 sps:$4 sm:$0xff]  }
 0x91a   :  { %1405 = vadd.xlane.f32.xlu1 %v1403_v36  ;;  %v4289_v37 = vmul.f32 %v4154_v55, %v1400_v35  ;;  %v3579_v35 = vld [vmem:[%s4711_s4 + $0x284] ss:$24 sps:$4 sm:$0xff]   ;;  %v3577_v36 = vld [vmem:[%s4711_s4 + $0x280] ss:$24 sps:$4 sm:$0xff]  }
 0x91c   :  { %v1404_v38 = vmul.f32 %v4289_v37, %v4289_v37 }
 0x91e   :  { %1407 = vadd.xlane.f32.xlu0 %v1404_v38  ;;  %v3580_v38 = vld [vmem:[%s4711_s4 + $0x250] ss:$24 sps:$4 sm:$0xff]  }
 0x9a3   :  { %v1406_v8 = vpop.xlane.xlu1 %1405 }
 0x9a4   :  { %v1409_v9 = vmul.f32 0.03125, %v1406_v8  ;;  %v1576_v8 = vrot.slane %v4447_v56, %v4042_v34 }
 0x9a6   :  { %v1411_v10 = vadd.f32 1e-05, %v1409_v9 }
 0x9a7   :  { %v1408_v11 = vpop.xlane.xlu0 %1407 }
 0x9a8   :  { %3679 = vrsqrt.f32 %v1411_v10  ;;  %v1410_v15 = vmul.f32 0.03125, %v1408_v11 }
 0x9aa   :  { %v1412_v16 = vadd.f32 1e-05, %v1410_v15 }
 0x9ac   :  { %3681 = vrsqrt.f32 %v1412_v16  ;;  %v1588_v16 = vrot.slane %v4447_v56, %v4049_v43 }
 0x9b5   :  { %v3680_v17 = vpop.eup %3679 }
 0x9b6   :  { %v1415_v18 = vmul.f32 %v3680_v17, %v4284_v33  ;;  %v3576_v33 = vld [vmem:[%s4711_s4 + $0x2b4] ss:$24 sps:$4 sm:$0xff]  }
 0x9b8   :  { %v1421_v24 = vmul.f32 %v1420_v19, %v1415_v18 }
 0x9b9   :  { %v3682_v21 = vpop.eup %3681 }
 0x9ba   :  { %v1416_v22 = vmul.f32 %v3682_v21, %v4289_v37  ;;  %v4387_v28 = vadd.f32 %v1426_v25, %v1421_v24  ;;  %v3582_v37 = vld [vmem:[%s4711_s4 + $0x254] ss:$24 sps:$4 sm:$0xff]  }
 0x9bc   :  { %v1422_v26 = vmul.f32 %v1420_v19, %v1416_v22 }
 0x9be   :  { %v4389_v30 = vadd.f32 %v1426_v25, %v1422_v26 }
 0x9c0   :  { %v1567_v32 = vpack.c.bf16 %v4389_v30, %v4387_v28 }
 0x9c2   :  { %1872 = vmatmul.mubr.bf16.vlgmr.msra.gmra.mxu1 %v1567_v32  ;;  %1915 = vmatmul.mubr.bf16.vlgmr.msra.gmra.mxu0 %v1567_v32 }
 0x9c3   :  { %1926 = vmatpush1.bf16.msra.mxu1 %v3571_v31  ;;  %1957 = vmatprep.mubr.bf16.mxu1 %v3729_v1 }
 0x9c4   :  { %1927 = vmatprep.subr.bf16.mxu1 %v3576_v33  ;;  %3337 = vmatprep.mubr.msk.bf16.mxu0 %vm3731_vm0, %v3730_v2 }
 0x9c7   :  { %1928 = vmatpush1.bf16.msra.mxu1 %v3574_v29 }
 0x9c8   :  { %1929 = vmatprep.subr.bf16.mxu1 %v3579_v35 }
 0x9cb   :  { %1930 = vmatpush1.bf16.msra.mxu1 %v3577_v36 }
 0x9cc   :  { %1931 = vmatprep.subr.bf16.mxu1 %v3582_v37 }
 0x9cf   :  { %1932 = vmatpush1.bf16.msra.mxu1 %v3580_v38 }
 0x9d0   :  { %1933 = vmatprep.subr.bf16.mxu1 %v3585_v39 }
 0x9d3   :  { %1934 = vmatpush1.bf16.msra.mxu1 %v3583_v40 }
 0x9d4   :  { %1935 = vmatprep.subr.bf16.mxu1 %v3588_v41 }
 0x9d7   :  { %1936 = vmatpush1.bf16.msra.mxu1 %v3586_v42 }
 0x9d8   :  { %1937 = vmatprep.subr.bf16.mxu1 %v3591_v44 }
 0x9db   :  { %1938 = vmatpush1.bf16.msra.mxu1 %v3589_v45 }
 0x9dc   :  { %1939 = vmatprep.subr.bf16.mxu1 %v3594_v47 }
 0x9df   :  { %1940 = vmatpush1.bf16.msra.mxu1 %v3592_v48 }
 0x9e0   :  { %3341 = vmatprep.subr.bf16.mxu1 %v3730_v2 }
 0x9e2   :  { %1958 = vmatmul.mubr.bf16.vlgmr.msra.gmra.mxu1 %v1567_v32 }
 0x9e3   :  { %3343 = vmatprep.mubr.msk.bf16.mxu1 %vm3731_vm0, %v3730_v2 }
 0xa82   :  { %v1873_v50 = vpop.f32.mrf.mxu1  ;;  %v1916_v52 = vpop.f32.mrf.mxu0 }
 0xa83   :  { %v1917_v59 = vadd.f32 %v1916_v52, %v1580_v53  ;;  %v1874_v5 = vadd.f32 %v1873_v50, %v1572_v63 }
 0xa84   :  { %v1918_v54 = vpop.f32.mrf.mxu0  ;;  %v1875_v58 = vpop.f32.mrf.mxu1 }
 0xa85   :  { %v1919_v6 = vadd.f32 %v1918_v54, %v1584_v3  ;;  %v1876_v10 = vadd.f32 %v1875_v58, %v1576_v8 }
 0xa86   :  { %v1920_v27 = vpop.f32.mrf.mxu0  ;;  %v1877_v61 = vpop.f32.mrf.mxu1 }
 0xa87   :  { %v1921_v60 = vadd.f32 %v1920_v27, %v1580_v53  ;;  %v1878_v12 = vadd.f32 %v1877_v61, %v1572_v63 }
 0xa88   :  { %v1922_v0 = vpop.f32.mrf.mxu0  ;;  %v1879_v46 = vpop.f32.mrf.mxu1 }
 0xa89   :  { %v1969_v62 = vpack.c.bf16 %v1921_v60, %v1917_v59  ;;  %v1923_v4 = vadd.f32 %v1922_v0, %v1584_v3  ;;  %v1968_v14 = vpack.c.bf16 %v1878_v12, %v1874_v5  ;;  %v1880_v9 = vadd.f32 %v1879_v46, %v1576_v8  ;;  %v3595_v5 = vld [vmem:[%s4713_s6 + $0xf8] sm:$0xff]   ;;  %v3598_v46 = vld [vmem:[%s4713_s6 + $0xb0] sm:$0xff]   ;;  %v3600_v8 = vld [vmem:[%s4713_s6 + $0xa8] sm:$0xff]  }
 0xa8b   :  { %3336 = vmatpush3.bf16.xpose.msra.mxu0 %v1969_v62  ;;  %v2080_v7 = vpack.c.bf16 %v1923_v4, %v1919_v6  ;;  %v2079_v11 = vpack.c.bf16 %v1880_v9, %v1876_v10  ;;  %v3596_v6 = vld [vmem:[%s4713_s6 + $0xb8] sm:$0xff]   ;;  %v3601_v9 = vld [vmem:[%s4713_s6 + $0xe0] sm:$0xff]  }
 0xa8c   :  { %3347 = vmatprep.subr.bf16.mxu0 %v3730_v2  ;;  %v3602_v10 = vld [vmem:[%s4713_s6 + $0xa0] sm:$0xff]  }
 0xa92   :  { %3338 = vmatmul.mubr.bf16.vlgmr.msra.gmra.mxu0 %v1968_v14  ;;  %v3597_v14 = vld [vmem:[%s4713_s6 + $0xf0] sm:$0xff]  }
 0xa93   :  { %3348 = vmatpush3.bf16.xpose.msra.mxu0 %v2080_v7  ;;  %3349 = vmatprep.mubr.msk.bf16.mxu0 %vm3731_vm0, %v3730_v2  ;;  %v3599_v7 = vld [vmem:[%s4713_s6 + $0xe8] sm:$0xff]  }
 0xa94   :  { %3238 = vmatprep.subr.bf16.mxu0 %v3595_v5 }
 0xa9a   :  { %3350 = vmatmul.mubr.bf16.vlgmr.msra.gmra.mxu0 %v2079_v11 }
 0xa9b   :  { %3239 = vmatpush3.bf16.msra.mxu0 %v3596_v6 }
 0xa9c   :  { %3240 = vmatprep.subr.bf16.mxu0 %v3597_v14 }
 0xa9f   :  { %3241 = vmatpush3.bf16.msra.mxu0 %v3598_v46  ;;  %v3611_v46 = vld [vmem:[%s4714_s7 + $0xf0] ss:$8 sps:$4 sm:$0xff]  }
 0xaa0   :  { %3242 = vmatprep.subr.bf16.mxu0 %v3599_v7  ;;  %v3613_v7 = vld [vmem:[%s4714_s7 + $0xf4] ss:$8 sps:$4 sm:$0xff]  }
 0xaa2   :  { %v1959_v15 = vpop.f32.mrf.mxu1 }
 0xaa3   :  { %v1960_v19 = vadd.f32 %v1959_v15, %v1588_v16  ;;  %3243 = vmatpush3.bf16.msra.mxu0 %v3600_v8 }
 0xaa4   :  { %v4462_v17 = vpop.f32.mrf.mxu1  ;;  %3244 = vmatprep.subr.bf16.mxu0 %v3601_v9 }
 0xaa6   :  { %v1963_v18 = vpop.f32.mrf.mxu1 }
 0xaa7   :  { %v1964_v21 = vadd.f32 %v1963_v18, %v1588_v16  ;;  %3245 = vmatpush3.bf16.msra.mxu0 %v3602_v10 }
 0xaa9   :  { %v1970_v22 = vpack.c.bf16 %v1964_v21, %v1960_v19  ;;  %v1965_v19 = vpop.f32.mrf.mxu1 }
 0xaab   :  { %3342 = vmatpush3.bf16.msra.mxu1 %v1970_v22  ;;  %v1592_v22 = vrot.slane %v4447_v56, %v4103_v49  ;;  %v3603_v56 = vld [vmem:[%s4713_s6 + $0xd8] sm:$0xff]  }
 0xaac   :  { %3353 = vmatprep.subr.bf16.mxu1 %v3730_v2  ;;  %3246 = vmatprep.subr.bf16.mxu0 %v3603_v56  ;;  %v3635_v56 = vld [vmem:[%s4716_s9 + $0xf8] sm:$0xff]  }
 0xb52   :  { %v2005_v24 = vpop.f32.mrf.mxu0 }
 0xb53   :  { %v2006_v25 = vadd.f32 %v2005_v24, %v4059_v51 }
 0xb54   :  { %v3339_v26 = vpop.f32.mrf.mxu0 }
 0xb55   :  { %v2012_v31 = vsel %vm749_vm4, %v2006_v25, -inf }
 0xb56   :  { %2013 = vmax.xlane.f32.xlu1 %v2012_v31  ;;  %v2008_v32 = vpop.f32.mrf.mxu0 }
 0xb57   :  { %v2009_v33 = vadd.f32 %v2008_v32, %v4065_v57  ;;  %v1962_v32 = vadd.f32 %v4462_v17, %v1592_v22  ;;  %v3604_v17 = vld [vmem:[%s4713_s6 + $0x98] sm:$0xff]  }
 0xb58   :  { %v3340_v29 = vpop.f32.mrf.mxu0  ;;  %3247 = vmatpush3.bf16.msra.mxu0 %v3604_v17  ;;  %v3636_v17 = vld [vmem:[%s4716_s9 + $0xb8] sm:$0xff]  }
 0xb59   :  { %v2015_v35 = vsel %vm749_vm4, %v2009_v33, -inf }
 0xb5a   :  { %2016 = vmax.xlane.f32.xlu0 %v2015_v35  ;;  %v2116_v36 = vpop.f32.mrf.mxu0 }
 0xb5b   :  { %v2117_v37 = vadd.f32 %v2116_v36, %v4059_v51 }
 0xb5c   :  { %v3351_v38 = vpop.f32.mrf.mxu0 }
 0xb5d   :  { %v2123_v39 = vsel %vm749_vm4, %v2117_v37, -inf }
 0xb5e   :  { %2124 = vmax.xlane.f32.xlu1 %v2123_v39  ;;  %v2119_v40 = vpop.f32.mrf.mxu0 }
 0xb5f   :  { %v2120_v41 = vadd.f32 %v2119_v40, %v4065_v57  ;;  %v3605_v40 = vld [vmem:[%s4713_s6 + $0xd0] sm:$0xff]  }
 0xb60   :  { %v3352_v42 = vpop.f32.mrf.mxu0  ;;  %3248 = vmatprep.subr.bf16.mxu0 %v3605_v40  ;;  %v3637_v40 = vld [vmem:[%s4716_s9 + $0xf0] sm:$0xff]  }
 0xb61   :  { %v2126_v44 = vsel %vm749_vm4, %v2120_v41, -inf  ;;  %v3608_v42 = vld [vmem:[%s4713_s6 + $0x88] sm:$0xff]  }
 0xb62   :  { %2127 = vmax.xlane.f32.xlu0 %v2126_v44  ;;  %v3609_v44 = vld [vmem:[%s4713_s6 + $0xc0] sm:$0xff]  }
 0xbdf   :  { %v2014_v45 = vpop.xlane.xlu1 %2013 }
 0xbe0   :  { %v2018_v47 = vsub.f32 %v2006_v25, %v2014_v45  ;;  %v1966_v25 = vadd.f32 %v1965_v19, %v1592_v22  ;;  %v3610_v45 = vld [vmem:[%s4713_s6 + $0x80] sm:$0xff]  }
 0xbe1   :  { %v3614_v22 = vld [vmem:[%s4714_s7 + $0xe0] ss:$8 sps:$4 sm:$0xff]  }
 0xbe2   :  { %v2020_v48 = vmul.f32 1.442695, %v2018_v47  ;;  %v2081_v29 = vpack.c.bf16 %v1966_v25, %v1962_v32  ;;  %v3617_v25 = vld [vmem:[%s4714_s7 + $0xd0] ss:$8 sps:$4 sm:$0xff]   ;;  %v3625_v32 = vld [vmem:[%s4714_s7 + $0xb4] ss:$8 sps:$4 sm:$0xff]  }
 0xbe3   :  { %v2017_v50 = vpop.xlane.xlu0 %2016 }
 0xbe4   :  { %3683 = vpow2.f32 %v2020_v48  ;;  %v2019_v52 = vsub.f32 %v2009_v33, %v2017_v50 }
 0xbe6   :  { %v2022_v53 = vmul.f32 1.442695, %v2019_v52 }
 0xbe7   :  { %v2125_v54 = vpop.xlane.xlu1 %2124 }
 0xbe8   :  { %3685 = vpow2.f32 %v2022_v53  ;;  %v2129_v51 = vsub.f32 %v2117_v37, %v2125_v54 }
 0xbea   :  { %v2131_v58 = vmul.f32 1.442695, %v2129_v51 }
 0xbeb   :  { %v2128_v27 = vpop.xlane.xlu0 %2127 }
 0xbec   :  { %3687 = vpow2.f32 %v2131_v58  ;;  %v2130_v59 = vsub.f32 %v2120_v41, %v2128_v27  ;;  %v3606_v41 = vld [vmem:[%s4713_s6 + $0x90] sm:$0xff]  }
 0xbed   :  { %3249 = vmatpush3.bf16.msra.mxu0 %v3606_v41  ;;  %v3638_v41 = vld [vmem:[%s4716_s9 + $0xb0] sm:$0xff]  }
 0xbee   :  { %v2133_v60 = vmul.f32 1.442695, %v2130_v59 }
 0xbf0   :  { %3689 = vpow2.f32 %v2133_v60  ;;  %v4536_v60 = vld [vmem:[%s4717_s10 + $0x8] sm:$0xff] }
 0xbf1   :  { %v3684_v57 = vpop.eup %3683 }
 0xbf2   :  { %v2024_v61 = vsel %vm749_vm4, %v3684_v57, 0.0 }
 0xbf3   :  { %2025 = vadd.xlane.f32.xlu1 %v2024_v61  ;;  %v2195_v61 = vrot.slane %v4536_v60, %v4031_v20 }
 0xbf5   :  { %v3686_v62 = vpop.eup %3685 }
 0xbf6   :  { %v2027_v63 = vsel %vm749_vm4, %v3686_v62, 0.0 }
 0xbf7   :  { %2028 = vadd.xlane.f32.xlu0 %v2027_v63 }
 0xbf9   :  { %v3688_v0 = vpop.eup %3687 }
 0xbfa   :  { %v2135_v3 = vsel %vm749_vm4, %v3688_v0, 0.0 }
 0xbfb   :  { %2136 = vadd.xlane.f32.xlu1 %v2135_v3 }
 0xbfd   :  { %v3690_v12 = vpop.eup %3689 }
 0xbfe   :  { %v2138_v4 = vsel %vm749_vm4, %v3690_v12, 0.0 }
 0xbff   :  { %2139 = vadd.xlane.f32.xlu0 %v2138_v4 }
 0xc7c   :  { %v2026_v11 = vpop.xlane.xlu1 %2025 }
 0xc7d   :  { %3691 = vrcp.f32 %v2026_v11 }
 0xc80   :  { %v2029_v15 = vpop.xlane.xlu0 %2028 }
 0xc81   :  { %3693 = vrcp.f32 %v2029_v15 }
 0xc84   :  { %v2137_v16 = vpop.xlane.xlu1 %2136 }
 0xc85   :  { %3695 = vrcp.f32 %v2137_v16 }
 0xc88   :  { %v2140_v18 = vpop.xlane.xlu0 %2139 }
 0xc89   :  { %3697 = vrcp.f32 %v2140_v18 }
 0xc8a   :  { %v3692_v21 = vpop.eup %3691 }
 0xc8b   :  { %v2032_v26 = vmul.f32 %v3692_v21, %v3684_v57  ;;  %v3616_v21 = vld [vmem:[%s4714_s7 + $0xe4] ss:$8 sps:$4 sm:$0xff]  }
 0xc8e   :  { %v3694_v24 = vpop.eup %3693 }
 0xc8f   :  { %v2033_v31 = vmul.f32 %v3694_v24, %v3686_v62  ;;  %v3619_v24 = vld [vmem:[%s4714_s7 + $0xd4] ss:$8 sps:$4 sm:$0xff]  }
 0xc91   :  { %v2034_v33 = vpack.c.bf16 %v2033_v31, %v2032_v26  ;;  %v3620_v26 = vld [vmem:[%s4714_s7 + $0xc0] ss:$8 sps:$4 sm:$0xff]   ;;  %v3622_v31 = vld [vmem:[%s4714_s7 + $0xc4] ss:$8 sps:$4 sm:$0xff]  }
 0xc92   :  { %v3696_v35 = vpop.eup %3695 }
 0xc93   :  { %3344 = vmatmul.mubr.msk.bf16.vlgmr.msra.gmra.mxu1 %vm749_vm4, %v2034_v33  ;;  %v2143_v37 = vmul.f32 %v3696_v35, %v3688_v0  ;;  %v3623_v33 = vld [vmem:[%s4714_s7 + $0xb0] ss:$8 sps:$4 sm:$0xff]   ;;  %v3626_v35 = vld [vmem:[%s4714_s7 + $0xa0] ss:$8 sps:$4 sm:$0xff]  }
 0xc94   :  { %3354 = vmatpush3.bf16.msra.mxu1 %v2081_v29  ;;  %3355 = vmatprep.mubr.msk.bf16.mxu1 %vm3731_vm0, %v3730_v2  ;;  %v3628_v29 = vld [vmem:[%s4714_s7 + $0xa4] ss:$8 sps:$4 sm:$0xff]  }
 0xc95   :  { %2463 = vmatprep.subr.bf16.mxu1 %v3613_v7  ;;  %v3649_v7 = vld [vmem:[%s4716_s9 + $0xc0] sm:$0xff]  }
 0xc96   :  { %v3698_v36 = vpop.eup %3697 }
 0xc97   :  { %v2144_v38 = vmul.f32 %v3698_v36, %v3690_v12  ;;  %v3631_v36 = vld [vmem:[%s4714_s7 + $0x94] ss:$8 sps:$4 sm:$0xff]  }
 0xc99   :  { %v2145_v39 = vpack.c.bf16 %v2144_v38, %v2143_v37  ;;  %v3629_v37 = vld [vmem:[%s4714_s7 + $0x90] ss:$8 sps:$4 sm:$0xff]   ;;  %v3634_v38 = vld [vmem:[%s4714_s7 + $0x84] ss:$8 sps:$4 sm:$0xff]  }
 0xc9b   :  { %3356 = vmatmul.mubr.msk.bf16.vlgmr.msra.gmra.mxu1 %vm749_vm4, %v2145_v39  ;;  %v3632_v39 = vld [vmem:[%s4714_s7 + $0x80] ss:$8 sps:$4 sm:$0xff]  }
 0xc9c   :  { %2495 = vmatprep.mubr.bf16.mxu1 %v3729_v1  ;;  %v3607_v1 = vld [vmem:[%s4713_s6 + $0xc8] sm:$0xff]   ;;  %2464 = vmatpush1.bf16.msra.mxu1 %v3611_v46 }
 0xc9d   :  { %3250 = vmatprep.subr.bf16.mxu0 %v3607_v1  ;;  %2465 = vmatprep.subr.bf16.mxu1 %v3616_v21  ;;  %v3639_v1 = vld [vmem:[%s4716_s9 + $0xe8] sm:$0xff]  }
 0xc9e   :  { %3251 = vmatpush3.bf16.msra.mxu0 %v3608_v42  ;;  %v3640_v42 = vld [vmem:[%s4716_s9 + $0xa8] sm:$0xff]  }
 0xc9f   :  { %3252 = vmatprep.subr.bf16.mxu0 %v3609_v44  ;;  %v3641_v44 = vld [vmem:[%s4716_s9 + $0xe0] sm:$0xff]   ;;  %v3648_v46 = vld [vmem:[%s4716_s9 + $0x88] sm:$0xff]  }
 0xca0   :  { %2466 = vmatpush1.bf16.msra.mxu1 %v3614_v22 }
 0xca1   :  { %2467 = vmatprep.subr.bf16.mxu1 %v3619_v24 }
 0xca2   :  { %3253 = vmatpush3.bf16.msra.mxu0 %v3610_v45  ;;  %v3642_v45 = vld [vmem:[%s4716_s9 + $0xa0] sm:$0xff]  }
 0xca3   :  { %3260 = vmatprep.subr.bf16.mxu0 %v3635_v56 }
 0xca4   :  { %2468 = vmatpush1.bf16.msra.mxu1 %v3617_v25 }
 0xca5   :  { %2469 = vmatprep.subr.bf16.mxu1 %v3622_v31 }
 0xca8   :  { %2470 = vmatpush1.bf16.msra.mxu1 %v3620_v26 }
 0xca9   :  { %2471 = vmatprep.subr.bf16.mxu1 %v3625_v32 }
 0xcac   :  { %2472 = vmatpush1.bf16.msra.mxu1 %v3623_v33 }
 0xcad   :  { %2473 = vmatprep.subr.bf16.mxu1 %v3628_v29 }
 0xcb0   :  { %2474 = vmatpush1.bf16.msra.mxu1 %v3626_v35 }
 0xcb1   :  { %2475 = vmatprep.subr.bf16.mxu1 %v3631_v36 }
 0xcb4   :  { %2476 = vmatpush1.bf16.msra.mxu1 %v3629_v37 }
 0xcb5   :  { %2477 = vmatprep.subr.bf16.mxu1 %v3634_v38 }
 0xcb8   :  { %2478 = vmatpush1.bf16.msra.mxu1 %v3632_v39 }
 0xcb9   :  { %3359 = vmatprep.subr.bf16.mxu1 %v3730_v2 }
 0xd53   :  { %v2072_v47 = vpop.f32.mrf.mxu1 }
 0xd55   :  { %v3345_v48 = vpop.f32.mrf.mxu1 }
 0xd56   :  { %v3644_v48 = vld [vmem:[%s4716_s9 + $0x98] sm:$0xff]  }
 0xd57   :  { %v2075_v50 = vpop.f32.mrf.mxu1 }
 0xd58   :  { %v2190_v27 = vpack.c.bf16 %v2075_v50, %v2072_v47  ;;  %v3643_v47 = vld [vmem:[%s4716_s9 + $0xd8] sm:$0xff]  }
 0xd59   :  { %v3346_v52 = vpop.f32.mrf.mxu1 }
 0xd5b   :  { %v2183_v53 = vpop.f32.mrf.mxu1 }
 0xd5d   :  { %v3357_v54 = vpop.f32.mrf.mxu1 }
 0xd5f   :  { %v2186_v51 = vpop.f32.mrf.mxu1 }
 0xd60   :  { %v2191_v58 = vpack.c.bf16 %v2186_v51, %v2183_v53 }
 0xd61   :  { %v3358_v59 = vpop.f32.mrf.mxu1 }
 0xd62   :  { %2324 = vmatprep.mubr.bf16.mxu0 %v2191_v58 }
 0xd63   :  { %2325 = vmatmul.mubr.bf16.vlgmr.msra.gmra.mxu0 %v2190_v27 }
 0xd64   :  { %3261 = vmatpush3.bf16.msra.mxu0 %v3636_v17 }
 0xd65   :  { %3262 = vmatprep.subr.bf16.mxu0 %v3637_v40 }
 0xd68   :  { %3263 = vmatpush3.bf16.msra.mxu0 %v3638_v41  ;;  %v3651_v41 = vld [vmem:[%s4718_s11 + $0x38] sm:$0xff]  }
 0xd69   :  { %3264 = vmatprep.subr.bf16.mxu0 %v3639_v1 }
 0xd6c   :  { %3265 = vmatpush3.bf16.msra.mxu0 %v3640_v42 }
 0xd6d   :  { %3266 = vmatprep.subr.bf16.mxu0 %v3641_v44 }
 0xd70   :  { %3267 = vmatpush3.bf16.msra.mxu0 %v3642_v45 }
 0xd71   :  { %3268 = vmatprep.subr.bf16.mxu0 %v3643_v47 }
 0xd74   :  { %3269 = vmatpush3.bf16.msra.mxu0 %v3644_v48 }
 0xe23   :  { %v3254_v57 = vpop.f32.mrf.mxu0 }
 0xe25   :  { %v3255_v62 = vpop.f32.mrf.mxu0 }
 0xe26   :  { %v3256_v63 = vadd.f32 %v3255_v62, %v3254_v57  ;;  %v2362_v57 = vrot.slane %v4536_v60, %v4042_v34 }
 0xe27   :  { %v3257_v0 = vpop.f32.mrf.mxu0 }
 0xe28   :  { %v2327_v3 = vadd.f32 %v3256_v63, %v2195_v61 }
 0xe29   :  { %v3258_v12 = vpop.f32.mrf.mxu0 }
 0xe2a   :  { %v3259_v4 = vadd.f32 %v3258_v12, %v3257_v0  ;;  %v2333_v5 = vadd.f32 %v2327_v3, %v4387_v28  ;;  %v2368_v0 = vrot.slane %v4536_v60, %v4021_v13  ;;  %v3647_v13 = vld [vmem:[%s4716_s9 + $0xc8] sm:$0xff]  }
 0xe2c   :  { %v2330_v6 = vadd.f32 %v3259_v4, %v2195_v61  ;;  %2335 = vadd.xlane.f32.xlu1 %v2333_v5 }
 0xe2e   :  { %v2334_v14 = vadd.f32 %v2330_v6, %v4389_v30  ;;  %v3645_v6 = vld [vmem:[%s4716_s9 + $0xd0] sm:$0xff]  }
 0xe2f   :  { %3270 = vmatprep.subr.bf16.mxu0 %v3645_v6  ;;  %v2682_v6 = vrot.slane %v4536_v60, %v4049_v43 }
 0xe30   :  { %2337 = vadd.xlane.f32.xlu0 %v2334_v14 }
 0xeb5   :  { %v2336_v8 = vpop.xlane.xlu1 %2335 }
 0xeb6   :  { %v2339_v9 = vmul.f32 0.03125, %v2336_v8  ;;  %v3650_v8 = vld [vmem:[%s4716_s9 + $0x80] sm:$0xff]  }
 0xeb8   :  { %v2341_v10 = vsub.f32 %v2333_v5, %v2339_v9  ;;  %v3028_v9 = vld [vmem:[%s4715_s8 + $0x2] sm:$0x3] }
 0xeb9   :  { %v2338_v11 = vpop.xlane.xlu0 %2337 }
 0xeba   :  { %v2340_v28 = vmul.f32 0.03125, %v2338_v11  ;;  %v4549_v15 = vmul.f32 %v4154_v55, %v2341_v10  ;;  %v2380_v11 = vrot.slane %v3028_v9, %v4042_v34  ;;  %v2515_v34 = vrot.slane %v4536_v60, %v4034_v23 }
 0xebc   :  { %v2342_v30 = vsub.f32 %v2334_v14, %v2340_v28  ;;  %v2345_v16 = vmul.f32 %v4549_v15, %v4549_v15  ;;  %v3646_v14 = vld [vmem:[%s4716_s9 + $0x90] sm:$0xff]   ;;  %v2376_v28 = vrot.slane %v3028_v9, %v4031_v20 }
 0xebd   :  { %3271 = vmatpush3.bf16.msra.mxu0 %v3646_v14 }
 0xebe   :  { %2347 = vadd.xlane.f32.xlu1 %v2345_v16  ;;  %v4554_v18 = vmul.f32 %v4154_v55, %v2342_v30  ;;  %3272 = vmatprep.subr.bf16.mxu0 %v3647_v13 }
 0xec0   :  { %v2346_v19 = vmul.f32 %v4554_v18, %v4554_v18 }
 0xec1   :  { %3273 = vmatpush3.bf16.msra.mxu0 %v3648_v46 }
 0xec2   :  { %2349 = vadd.xlane.f32.xlu0 %v2346_v19  ;;  %3274 = vmatprep.subr.bf16.mxu0 %v3649_v7 }
 0xec5   :  { %3275 = vmatpush3.bf16.msra.mxu0 %v3650_v8 }
 0xf47   :  { %v2348_v50 = vpop.xlane.xlu1 %2347 }
 0xf48   :  { %v2351_v52 = vmul.f32 0.03125, %v2348_v50 }
 0xf4a   :  { %v2353_v53 = vadd.f32 1e-05, %v2351_v52 }
 0xf4b   :  { %v2350_v54 = vpop.xlane.xlu0 %2349 }
 0xf4c   :  { %3699 = vrsqrt.f32 %v2353_v53  ;;  %v2352_v51 = vmul.f32 0.03125, %v2350_v54  ;;  %v3652_v54 = vld [vmem:[%s4718_s11 + $0x30] sm:$0xff]  }
 0xf4e   :  { %v2354_v58 = vadd.f32 1e-05, %v2352_v51  ;;  %v3653_v51 = vld [vmem:[%s4718_s11 + $0x28] sm:$0xff]  }
 0xf50   :  { %3701 = vrsqrt.f32 %v2354_v58  ;;  %v3654_v58 = vld [vmem:[%s4718_s11 + $0x20] sm:$0xff]  }
 0xf59   :  { %v3700_v27 = vpop.eup %3699 }
 0xf5a   :  { %v2357_v59 = vmul.f32 %v3700_v27, %v4549_v15  ;;  %v3656_v27 = vld [vmem:[%s4718_s11 + $0x10] sm:$0xff]  }
 0xf5c   :  { %v2363_v63 = vmul.f32 %v2362_v57, %v2357_v59  ;;  %v3657_v59 = vld [vmem:[%s4718_s11 + $0x8] sm:$0xff]  }
 0xf5d   :  { %v3702_v61 = vpop.eup %3701 }
 0xf5e   :  { %v2358_v62 = vmul.f32 %v3702_v61, %v4554_v18  ;;  %v2369_v12 = vadd.f32 %v2368_v0, %v2363_v63 }
 0xf60   :  { %v2364_v3 = vmul.f32 %v2362_v57, %v2358_v62  ;;  %v3658_v57 = vld [vmem:[%s4718_s11] sm:$0xff]  }
 0xf62   :  { %v2370_v4 = vadd.f32 %v2368_v0, %v2364_v3 }
 0xf64   :  { %v2371_v5 = vpack.c.bf16 %v2370_v4, %v2369_v12 }
 0xf66   :  { %2496 = vmatmul.mubr.bf16.vlgmr.msra.gmra.mxu1 %v2371_v5 }
 0xf67   :  { %3375 = vmatprep.mubr.msk.bf16.mxu1 %vm3731_vm0, %v3730_v2  ;;  %3360 = vmatpush3.bf16.msra.mxu1 %v3651_v41 }
 0xf68   :  { %3361 = vmatprep.subr.bf16.mxu1 %v3730_v2 }
 0xf6b   :  { %3362 = vmatpush3.bf16.msra.mxu1 %v3652_v54 }
 0xf6c   :  { %3363 = vmatprep.subr.bf16.mxu1 %v3730_v2 }
 0xf6f   :  { %3364 = vmatpush3.bf16.msra.mxu1 %v3653_v51 }
 0xf70   :  { %3365 = vmatprep.subr.bf16.mxu1 %v3730_v2 }
 0xf73   :  { %3366 = vmatpush3.bf16.msra.mxu1 %v3654_v58 }
 0xf74   :  { %3367 = vmatprep.subr.bf16.mxu1 %v3730_v2 }
0x1026   :  { %v2497_v10 = vpop.f32.mrf.mxu1 }
0x1027   :  { %v2498_v19 = vadd.f32 %v2497_v10, %v2376_v28 }
0x1028   :  { %v2499_v15 = vpop.f32.mrf.mxu1 }
0x1029   :  { %v2500_v16 = vadd.f32 %v2499_v15, %v2380_v11  ;;  %v2506_v31 = vmax.f32 %v2498_v19, 0.0 }
0x102a   :  { %v2501_v30 = vpop.f32.mrf.mxu1 }
0x102b   :  { %v2502_v18 = vadd.f32 %v2501_v30, %v2376_v28  ;;  %v2507_v25 = vmax.f32 %v2500_v16, 0.0 }
0x102c   :  { %v2503_v21 = vpop.f32.mrf.mxu1 }
0x102d   :  { %v2504_v22 = vadd.f32 %v2503_v21, %v2380_v11  ;;  %v2508_v24 = vmax.f32 %v2502_v18, 0.0  ;;  %v3160_v11 = vld [vmem:[%s4719_s12] ss:$0 sm:$0xff] }
0x102f   :  { %v2509_v26 = vmax.f32 %v2504_v22, 0.0  ;;  %v2510_v33 = vpack.c.bf16 %v2508_v24, %v2506_v31 }
0x1031   :  { %v2511_v32 = vpack.c.bf16 %v2509_v26, %v2507_v25 }
0x1033   :  { %2644 = vmatprep.mubr.bf16.mxu0 %v2511_v32 }
0x1034   :  { %2645 = vmatmul.mubr.bf16.vlgmr.msra.gmra.mxu0 %v2510_v33 }
0x10f4   :  { %v3276_v29 = vpop.f32.mrf.mxu0 }
0x10f6   :  { %v3277_v20 = vpop.f32.mrf.mxu0 }
0x10f7   :  { %v3278_v35 = vadd.f32 %v3277_v20, %v3276_v29 }
0x10f8   :  { %v3279_v36 = vpop.f32.mrf.mxu0 }
0x10f9   :  { %v2647_v37 = vadd.f32 %v3278_v35, %v2515_v34 }
0x10fa   :  { %v3280_v38 = vpop.f32.mrf.mxu0 }
0x10fb   :  { %v3281_v39 = vadd.f32 %v3280_v38, %v3279_v36  ;;  %v2653_v56 = vadd.f32 %v2647_v37, %v2369_v12 }
0x10fd   :  { %v2650_v17 = vadd.f32 %v3281_v39, %v2515_v34  ;;  %2655 = vadd.xlane.f32.xlu1 %v2653_v56 }
0x10ff   :  { %v2654_v40 = vadd.f32 %v2650_v17, %v2370_v4 }
0x1101   :  { %2657 = vadd.xlane.f32.xlu0 %v2654_v40 }
0x1186   :  { %v2656_v1 = vpop.xlane.xlu1 %2655 }
0x1187   :  { %v2659_v23 = vmul.f32 0.03125, %v2656_v1 }
0x1189   :  { %v2661_v42 = vsub.f32 %v2653_v56, %v2659_v23 }
0x118a   :  { %v2658_v44 = vpop.xlane.xlu0 %2657 }
0x118b   :  { %v2660_v45 = vmul.f32 0.03125, %v2658_v44  ;;  %v2663_v47 = vmul.f32 %v4154_v55, %v2661_v42 }
0x118d   :  { %v2662_v48 = vsub.f32 %v2654_v40, %v2660_v45  ;;  %v2665_v50 = vmul.f32 %v2663_v47, %v2663_v47 }
0x118f   :  { %2667 = vadd.xlane.f32.xlu1 %v2665_v50  ;;  %v2664_v52 = vmul.f32 %v4154_v55, %v2662_v48  ;;  %v3655_v55 = vld [vmem:[%s4718_s11 + $0x18] sm:$0xff]  }
0x1190   :  { %3368 = vmatpush3.bf16.msra.mxu1 %v3655_v55 }
0x1191   :  { %v2666_v53 = vmul.f32 %v2664_v52, %v2664_v52  ;;  %3369 = vmatprep.subr.bf16.mxu1 %v3730_v2 }
0x1193   :  { %2669 = vadd.xlane.f32.xlu0 %v2666_v53 }
0x1194   :  { %3370 = vmatpush3.bf16.msra.mxu1 %v3656_v27 }
0x1195   :  { %3371 = vmatprep.subr.bf16.mxu1 %v3730_v2 }
0x1198   :  { %3372 = vmatpush3.bf16.msra.mxu1 %v3657_v59 }
0x1199   :  { %3373 = vmatprep.subr.bf16.mxu1 %v3730_v2  ;;  %v2688_v2 = vrot.slane %v4536_v60, %v4103_v49 }
0x119c   :  { %3374 = vmatpush3.bf16.msra.mxu1 %v3658_v57 }
0x1218   :  { %v2668_v61 = vpop.xlane.xlu1 %2667 }
0x1219   :  { %v2671_v62 = vmul.f32 0.03125, %v2668_v61 }
0x121b   :  { %v2673_v63 = vadd.f32 1e-05, %v2671_v62 }
0x121c   :  { %v2670_v0 = vpop.xlane.xlu0 %2669 }
0x121d   :  { %3703 = vrsqrt.f32 %v2673_v63  ;;  %v2672_v3 = vmul.f32 0.03125, %v2670_v0 }
0x121f   :  { %v2674_v12 = vadd.f32 1e-05, %v2672_v3 }
0x1221   :  { %3705 = vrsqrt.f32 %v2674_v12 }
0x122a   :  { %v3704_v4 = vpop.eup %3703 }
0x122b   :  { %v2677_v5 = vmul.f32 %v3704_v4, %v2663_v47 }
0x122d   :  { %v2683_v46 = vmul.f32 %v2682_v6, %v2677_v5 }
0x122e   :  { %v3706_v14 = vpop.eup %3705 }
0x122f   :  { %v2678_v13 = vmul.f32 %v3706_v14, %v2664_v52  ;;  %v2689_v8 = vadd.f32 %v2688_v2, %v2683_v46 }
0x1231   :  { %v2684_v7 = vmul.f32 %v2682_v6, %v2678_v13 }
0x1233   :  { %v2690_v9 = vadd.f32 %v2688_v2, %v2684_v7 }
0x1235   :  { %v2691_v10 = vpack.c.bf16 %v2690_v9, %v2689_v8 }
0x1237   :  { %3376 = vmatmul.mubr.bf16.vlgmr.msra.gmra.mxu1 %v2691_v10 }
0x12f7   :  { %v2797_v28 = vpop.f32.mrf.mxu1 }
0x12f8   :  { %v2798_v15 = vadd.f32 %v3160_v11, %v2797_v28 }
0x12f9   :  { %v3377_v30 = vpop.f32.mrf.mxu1 }
0x12fa   :  { %2804 = vst [vmem:[#allocation2] sm:$0xff] %v2798_v15 }
0x12fb   :  { %v2800_v43 = vpop.f32.mrf.mxu1 }
0x12fc   :  { %v2801_v16 = vadd.f32 %v3160_v11, %v2800_v43 }
0x12fd   :  { %v3378_v18 = vpop.f32.mrf.mxu1 }
0x12fe   :  { %2805 = vst [vmem:[#allocation2 + $0x8] sm:$0xff] %v2801_v16 }
0x12ff   :  { %3718 = shalt.err (!%p3715_p4)
}
0x1300   :  { %s3734_s19 = smov 128   ;;  %s3735_s12 = smov 8  }
0x1301   :  { %2817 = dma.vmem_to_hbm [thread:$0]  %s2812_s3, 256, %s4720_s13, [#allocation3], %s3734_s19, %s3734_s19, %s3735_s12  }
0x1302   :  { %3727 = dma.done.wait [#allocation3], 256  }
0x1303   :  { %3728 = vsyncadd [#allocation3], 4294967040 }
0x1304   :  { %2821 = vsyncpa [#allocation3], 1 }

</bundles_post_ra>
